<compile_context>
chip_gen: v6e
topology: v6e:2x2x1
jax: 0.10.0
libtpu: 0.0.40
codegen_flags: <defaults>
</compile_context>

<pallas_src>
import functools
import math

import jax
import jax.numpy as jnp
import numpy as np
from jax.experimental import pallas as pl
from jax.experimental.pallas import tpu as pltpu

NUM_HEADING_BIN = 12
NUM_SIZE_CLUSTER = 8


def get_mean_size_array(num_size_cluster):
    # Deterministic, strictly-positive "mean size" table (NS, 3).
    i = np.arange(num_size_cluster, dtype=np.float32)
    return np.stack([1.0 + 0.25 * i, 0.8 + 0.15 * i, 0.6 + 0.1 * i], axis=1)


# ----------------------------------------------------------------------------
# packed-slab layout (shared between wrapper and kernel)
# ----------------------------------------------------------------------------
def _slab_layout(num_heading_bin, num_size_cluster):
    NH, NS = num_heading_bin, num_size_cluster
    fields = [
        ('center_label', 3), ('center', 3), ('stage1_center', 3),
        ('heading_scores', NH), ('hrn', NH), ('hres', NH),
        ('size_scores', NS),
        ('srn_x', NS), ('srn_y', NS), ('srn_z', NS),
        ('sr_x', NS), ('sr_y', NS), ('sr_z', NS),
        ('sr_label', 3), ('hr_label', 1),
    ]
    offs = {}
    o = 0
    for name, w in fields:
        offs[name] = (o, o + w)
        o += w
    f_pad = ((o + 127) // 128) * 128
    return offs, o, f_pad


# ----------------------------------------------------------------------------
# Pallas kernel
# ----------------------------------------------------------------------------
def _box3d_loss_kernel(slab_ref, labels_ref, mean_ref, out_ref, *,
                       num_heading_bin, num_size_cluster,
                       box_loss_weight, corner_loss_weight):
    NH = num_heading_bin
    NS = num_size_cluster

    slab = slab_ref[...]                      # (B, F_pad) f32 — one dense vld
    labels = labels_ref[...]                  # (B, 2) int32
    mean_row = mean_ref[...]                  # (1, M_pad) f32 [mean_x|mean_y|mean_z]
    B = slab.shape[0]

    offs, _, _ = _slab_layout(NH, NS)

    def f(name):
        lo, hi = offs[name]
        return slab[:, lo:hi]

    # ---- in-kernel derived "constants" (no captured arrays) -------------------
    mean_x = mean_row[:, 0:NS]                                     # (1, NS)
    mean_y = mean_row[:, NS:2 * NS]
    mean_z = mean_row[:, 2 * NS:3 * NS]

    iota_h = jax.lax.broadcasted_iota(jnp.int32, (B, NH), 1)
    iota_s = jax.lax.broadcasted_iota(jnp.int32, (B, NS), 1)
    onehot_hc = (iota_h == labels[:, 0:1]).astype(jnp.float32)     # (B, NH)
    onehot_sc = (iota_s == labels[:, 1:2]).astype(jnp.float32)     # (B, NS)

    bin_centers = iota_h.astype(jnp.float32) * (2.0 * math.pi / NH)  # (B, NH)

    # corner +/- templates built from an 8-wide iota:
    #   x: [+ + - - + + - -]   y: [+ + + + - - - -]   z: [+ - - + + - - +]
    kk = jax.lax.broadcasted_iota(jnp.int32, (B, 8), 1)
    sgn_x = (1 - 2 * ((kk >> 1) & 1)).astype(jnp.float32)
    sgn_y = (1 - 2 * ((kk >> 2) & 1)).astype(jnp.float32)
    sgn_z = (1 - 2 * (((kk + 1) >> 1) & 1)).astype(jnp.float32)

    # ---- reduction helpers (full-reduce to scalars, stored via SMEM) ---------
    def huber_mean(err, delta, count):
        abs_err = jnp.abs(err)
        quad = jnp.minimum(abs_err, delta)
        lin = abs_err - quad
        return jnp.sum(0.5 * quad * quad + delta * lin) * (1.0 / count)

    def ce_mean(scores, onehot):
        m = jnp.max(scores, axis=1, keepdims=True)
        lse = m + jnp.log(jnp.sum(jnp.exp(scores - m), axis=1, keepdims=True))
        sel = jnp.sum(scores * onehot, axis=1, keepdims=True)
        return jnp.sum(lse - sel) * (1.0 / B)

    center_label = f('center_label')
    center = f('center')
    stage1_center = f('stage1_center')

    # ---- center losses (L1 norm over xyz, then huber mean) -------------------
    center_dist = jnp.sum(jnp.abs(center_label - center), axis=1, keepdims=True)
    center_loss = huber_mean(center_dist, 2.0, B)
    s1_dist = jnp.sum(jnp.abs(center_label - stage1_center), axis=1, keepdims=True)
    stage1_center_loss = huber_mean(s1_dist, 1.0, B)

    # ---- heading losses -------------------------------------------------------
    heading_class_loss = ce_mean(f('heading_scores'), onehot_hc)
    hr_label = f('hr_label')                                       # (B,1)
    hrn_pred = jnp.sum(f('hrn') * onehot_hc, axis=1, keepdims=True)
    hrn_err = hrn_pred - hr_label / (math.pi / NH)
    heading_residual_normalized_loss = huber_mean(hrn_err, 1.0, B)

    # ---- size losses ----------------------------------------------------------
    size_class_loss = ce_mean(f('size_scores'), onehot_sc)
    msl_x = jnp.sum(onehot_sc * mean_x, axis=1, keepdims=True)     # (B,1)
    msl_y = jnp.sum(onehot_sc * mean_y, axis=1, keepdims=True)
    msl_z = jnp.sum(onehot_sc * mean_z, axis=1, keepdims=True)
    pred_x = jnp.sum(f('srn_x') * onehot_sc, axis=1, keepdims=True)
    pred_y = jnp.sum(f('srn_y') * onehot_sc, axis=1, keepdims=True)
    pred_z = jnp.sum(f('srn_z') * onehot_sc, axis=1, keepdims=True)
    sr_label = f('sr_label')                                       # (B,3)
    size_dist = (jnp.abs(sr_label[:, 0:1] / msl_x - pred_x) +
                 jnp.abs(sr_label[:, 1:2] / msl_y - pred_y) +
                 jnp.abs(sr_label[:, 2:3] / msl_z - pred_z))
    size_residuals_normalized_loss = huber_mean(size_dist, 1.0, B)

    # ---- corner loss ----------------------------------------------------------
    # gt_mask = onehot_hc x onehot_sc selects exactly one (heading, size) pair,
    # so only the selected box is built.  sum(onehot)==1 lets us reuse the
    # already-computed selects instead of re-reducing (mean + residual) terms.
    bin_sel = jnp.sum(onehot_hc * bin_centers, axis=1, keepdims=True)
    heading_pred = jnp.sum(onehot_hc * f('hres'), axis=1, keepdims=True) + bin_sel
    heading_gt = hr_label + bin_sel
    size_pred_l = msl_x + jnp.sum(onehot_sc * f('sr_x'), axis=1, keepdims=True)
    size_pred_w = msl_y + jnp.sum(onehot_sc * f('sr_y'), axis=1, keepdims=True)
    size_pred_h = msl_z + jnp.sum(onehot_sc * f('sr_z'), axis=1, keepdims=True)
    size_gt_l = msl_x + sr_label[:, 0:1]
    size_gt_w = msl_y + sr_label[:, 1:2]
    size_gt_h = msl_z + sr_label[:, 2:3]

    def corner_xyz(cx, cy, cz, heading, l, w, h):
        xc = 0.5 * l * sgn_x                                        # (B,8)
        yc = 0.5 * h * sgn_y
        zc = 0.5 * w * sgn_z
        c = jnp.cos(heading)
        s = jnp.sin(heading)
        x = c * xc + s * zc + cx
        y = yc + cy
        z = -s * xc + c * zc + cz
        return x, y, z

    px, py, pz = corner_xyz(center[:, 0:1], center[:, 1:2], center[:, 2:3],
                            heading_pred, size_pred_l, size_pred_w, size_pred_h)
    clx = center_label[:, 0:1]
    cly = center_label[:, 1:2]
    clz = center_label[:, 2:3]
    gx, gy, gz = corner_xyz(clx, cly, clz, heading_gt,
                            size_gt_l, size_gt_w, size_gt_h)
    # flip corners: cos(t+pi)=-cos(t), sin(t+pi)=-sin(t) => fx=2clx-gx, fy=gy, fz=2clz-gz
    dy = jnp.abs(py - gy)
    d_gt = jnp.abs(px - gx) + dy + jnp.abs(pz - gz)                 # (B,8)
    d_flip = jnp.abs(px + gx - 2.0 * clx) + dy + jnp.abs(pz + gz - 2.0 * clz)
    corners_dist = jnp.minimum(d_gt, d_flip)
    corner_loss = huber_mean(corners_dist, 1.0, B * 8)

    total_loss = box_loss_weight * (
        center_loss + heading_class_loss + size_class_loss +
        heading_residual_normalized_loss * 20.0 +
        size_residuals_normalized_loss * 20.0 +
        stage1_center_loss + corner_loss_weight * corner_loss)

    # ---- scalar outputs to SMEM ----------------------------------------------
    out_ref[0] = center_loss
    out_ref[1] = stage1_center_loss
    out_ref[2] = heading_class_loss
    out_ref[3] = heading_residual_normalized_loss
    out_ref[4] = size_class_loss
    out_ref[5] = size_residuals_normalized_loss
    out_ref[6] = corner_loss
    out_ref[7] = total_loss


# ----------------------------------------------------------------------------
# wrapper (plain-JAX glue: pack everything into lane-dense slabs)
# ----------------------------------------------------------------------------
def box3d_model_loss(center_label, heading_class_label, heading_residual_label,
                     size_class_label, size_residual_label, endpoints,
                     mean_size_array, box_loss_weight=1.0, corner_loss_weight=10.0):
    B = center_label.shape[0]
    NH = endpoints['heading_scores'].shape[1]
    NS = endpoints['size_scores'].shape[1]
    srn = endpoints['size_residuals_normalized'].astype(jnp.float32)
    sres = endpoints['size_residuals'].astype(jnp.float32)

    _, f_total, f_pad = _slab_layout(NH, NS)
    parts = [
        center_label.astype(jnp.float32),                              # 3
        endpoints['center'].astype(jnp.float32),                       # 3
        endpoints['stage1_center'].astype(jnp.float32),                # 3
        endpoints['heading_scores'].astype(jnp.float32),               # NH
        endpoints['heading_residuals_normalized'].astype(jnp.float32), # NH
        endpoints['heading_residuals'].astype(jnp.float32),            # NH
        endpoints['size_scores'].astype(jnp.float32),                  # NS
        srn[:, :, 0], srn[:, :, 1], srn[:, :, 2],                      # 3*NS
        sres[:, :, 0], sres[:, :, 1], sres[:, :, 2],                   # 3*NS
        size_residual_label.astype(jnp.float32),                       # 3
        heading_residual_label.astype(jnp.float32).reshape(B, 1),      # 1
    ]
    slab = jnp.concatenate(parts, axis=1)
    if f_pad > f_total:
        slab = jnp.pad(slab, ((0, 0), (0, f_pad - f_total)))
    labels = jnp.stack([heading_class_label.astype(jnp.int32),
                        size_class_label.astype(jnp.int32)], axis=1)   # (B,2)

    # mean-size table as a lane-dense (1, M_pad) input [mean_x | mean_y | mean_z]
    mean_f = jnp.asarray(mean_size_array, jnp.float32)                 # (NS, 3)
    mean_flat = jnp.concatenate([mean_f[:, 0], mean_f[:, 1], mean_f[:, 2]], axis=0)
    m_pad = ((3 * NS + 127) // 128) * 128
    mean_slab = jnp.pad(mean_flat, (0, m_pad - 3 * NS)).reshape(1, m_pad)

    kernel = functools.partial(
        _box3d_loss_kernel, num_heading_bin=NH, num_size_cluster=NS,
        box_loss_weight=float(box_loss_weight),
        corner_loss_weight=float(corner_loss_weight))

    out = pl.pallas_call(
        kernel,
        out_shape=jax.ShapeDtypeStruct((8,), jnp.float32),
        in_specs=[pl.BlockSpec(memory_space=pltpu.MemorySpace.VMEM),
                  pl.BlockSpec(memory_space=pltpu.MemorySpace.VMEM),
                  pl.BlockSpec(memory_space=pltpu.MemorySpace.VMEM)],
        out_specs=pl.BlockSpec(memory_space=pltpu.MemorySpace.SMEM),
    )(slab, labels, mean_slab)

    names = ('center_loss', 'stage1_center_loss', 'heading_class_loss',
             'heading_residual_normalized_loss', 'size_class_loss',
             'size_residuals_normalized_loss', 'corner_loss', 'total_loss')
    return {n: out[i] for i, n in enumerate(names)}


# ----------------------------------------------------------------------------
# pure-JAX reference (faithful to the PyTorch module, incl. the full
# (B, NH, NS, 8, 3) corner tensor + gt_mask reduction)
# ----------------------------------------------------------------------------
def _huber_mean_ref(err, delta):
    abs_err = jnp.abs(err)
    quad = jnp.minimum(abs_err, delta)
    lin = abs_err - quad
    return jnp.mean(0.5 * quad * quad + delta * lin)


def _corners_helper_ref(centers, headings, sizes):
    l = sizes[:, 0:1]; w = sizes[:, 1:2]; h = sizes[:, 2:3]
    x_t = jnp.array([1, 1, -1, -1, 1, 1, -1, -1], jnp.float32)
    y_t = jnp.array([1, 1, 1, 1, -1, -1, -1, -1], jnp.float32)
    z_t = jnp.array([1, -1, -1, 1, 1, -1, -1, 1], jnp.float32)
    xc = 0.5 * l * x_t
    yc = 0.5 * h * y_t
    zc = 0.5 * w * z_t
    c = jnp.cos(headings)[:, None]
    s = jnp.sin(headings)[:, None]
    x = c * xc + s * zc + centers[:, 0:1]
    y = yc + centers[:, 1:2]
    z = -s * xc + c * zc + centers[:, 2:3]
    return jnp.stack([x, y, z], axis=-1)                          # (N,8,3)


def reference_loss(center_label, hc_label, hr_label, sc_label, sr_label,
                   endpoints, mean_size_array, box_loss_weight=1.0,
                   corner_loss_weight=10.0):
    B = center_label.shape[0]
    NH = endpoints['heading_scores'].shape[1]
    NS = endpoints['size_scores'].shape[1]
    msa = jnp.asarray(mean_size_array, jnp.float32)

    onehot_hc = jax.nn.one_hot(hc_label, NH, dtype=jnp.float32)
    onehot_sc = jax.nn.one_hot(sc_label, NS, dtype=jnp.float32)

    center_loss = _huber_mean_ref(
        jnp.sum(jnp.abs(center_label - endpoints['center']), axis=-1), 2.0)
    stage1_center_loss = _huber_mean_ref(
        jnp.sum(jnp.abs(center_label - endpoints['stage1_center']), axis=-1), 1.0)

    def ce(scores, labels):
        return jnp.mean(-jax.nn.log_softmax(scores, axis=1)[jnp.arange(B), labels])

    heading_class_loss = ce(endpoints['heading_scores'], hc_label)
    hrn_label = hr_label / (np.pi / NH)
    hrn_pred = jnp.sum(endpoints['heading_residuals_normalized'] * onehot_hc, axis=1)
    hrn_loss = _huber_mean_ref(hrn_pred - hrn_label, 1.0)

    size_class_loss = ce(endpoints['size_scores'], sc_label)
    onehot_rep = onehot_sc[:, :, None]
    pred_srn = jnp.sum(endpoints['size_residuals_normalized'] * onehot_rep, axis=1)
    mean_size_label = jnp.sum(onehot_rep * msa[None], axis=1)
    srl_norm = sr_label / mean_size_label
    srn_loss = _huber_mean_ref(jnp.sum(jnp.abs(srl_norm - pred_srn), axis=-1), 1.0)

    bin_centers = jnp.arange(NH, dtype=jnp.float32) * (2 * np.pi / NH)
    headings = endpoints['heading_residuals'] + bin_centers[None]
    sizes = msa[None] + endpoints['size_residuals']
    centers_r = jnp.broadcast_to(endpoints['center'][:, None, None, :],
                                 (B, NH, NS, 3)).reshape(-1, 3)
    headings_r = jnp.broadcast_to(headings[:, :, None], (B, NH, NS)).reshape(-1)
    sizes_r = jnp.broadcast_to(sizes[:, None, :, :], (B, NH, NS, 3)).reshape(-1, 3)
    corners_3d = _corners_helper_ref(centers_r, headings_r, sizes_r).reshape(
        B, NH, NS, 8, 3)
    gt_mask = onehot_hc[:, :, None] * onehot_sc[:, None, :]
    corners_pred = jnp.sum(gt_mask[:, :, :, None, None] * corners_3d, axis=(1, 2))

    heading_label = jnp.sum(onehot_hc * (hr_label[:, None] + bin_centers[None]), axis=1)
    size_label = jnp.sum(onehot_sc[:, :, None] * (msa[None] + sr_label[:, None, :]),
                         axis=1)
    corners_gt = _corners_helper_ref(center_label, heading_label, size_label)
    corners_flip = _corners_helper_ref(center_label, heading_label + np.pi, size_label)
    corners_dist = jnp.minimum(
        jnp.sum(jnp.abs(corners_pred - corners_gt), axis=-1),
        jnp.sum(jnp.abs(corners_pred - corners_flip), axis=-1))
    corner_loss = _huber_mean_ref(corners_dist, 1.0)

    return box_loss_weight * (center_loss + heading_class_loss + size_class_loss +
                              hrn_loss * 20 + srn_loss * 20 + stage1_center_loss +
                              corner_loss_weight * corner_loss)


if __name__ == "__main__":
    B = 8
    NH = NUM_HEADING_BIN
    NS = NUM_SIZE_CLUSTER

    key = jax.random.PRNGKey(0)
    keys = jax.random.split(key, 12)
    mean_size_array = get_mean_size_array(NS)

    center_label = jax.random.normal(keys[0], (B, 3), jnp.float32) * 2.0
    heading_class_label = jax.random.randint(keys[1], (B,), 0, NH)
    heading_residual_label = (jax.random.uniform(keys[2], (B,), jnp.float32) - 0.5) * (np.pi / NH)
    size_class_label = jax.random.randint(keys[3], (B,), 0, NS)
    size_residual_label = jax.random.normal(keys[4], (B, 3), jnp.float32) * 0.1

    endpoints = {
        'center': center_label + jax.random.normal(keys[5], (B, 3), jnp.float32) * 0.3,
        'stage1_center': center_label + jax.random.normal(keys[6], (B, 3), jnp.float32) * 0.5,
        'heading_scores': jax.random.normal(keys[7], (B, NH), jnp.float32),
        'heading_residuals_normalized': jax.random.normal(keys[8], (B, NH), jnp.float32) * 0.2,
        'size_scores': jax.random.normal(keys[9], (B, NS), jnp.float32),
        'size_residuals_normalized': jax.random.normal(keys[10], (B, NS, 3), jnp.float32) * 0.1,
    }
    endpoints['heading_residuals'] = (
        endpoints['heading_residuals_normalized'] * (np.pi / NH))
    endpoints['size_residuals'] = (
        endpoints['size_residuals_normalized'] * jnp.asarray(mean_size_array)[None])

    losses = box3d_model_loss(center_label, heading_class_label,
                              heading_residual_label, size_class_label,
                              size_residual_label, endpoints, mean_size_array,
                              box_loss_weight=1.0, corner_loss_weight=10.0)
    total = jax.block_until_ready(losses['total_loss'])

    ref_total = reference_loss(center_label, heading_class_label,
                               heading_residual_label, size_class_label,
                               size_residual_label, endpoints, mean_size_array,
                               box_loss_weight=1.0, corner_loss_weight=10.0)
    np.testing.assert_allclose(np.asarray(total), np.asarray(ref_total),
                               rtol=1e-3, atol=1e-4)
    print("KERNEL_OK")
</pallas_src>

<mosaic_0001>
module attributes {stable_mosaic.version = 11 : i64} {
  func.func @_box3d_loss_kernel(%arg0: memref<8x128xf32, #tpu.memory_space<vmem>>, %arg1: memref<8x2xi32, #tpu.memory_space<vmem>>, %arg2: memref<1x128xf32, #tpu.memory_space<vmem>>, %arg3: memref<8xf32, #tpu.memory_space<smem>>) attributes {dimension_semantics = [], scalar_prefetch = 0 : i64, scratch_operands = 0 : i64, tpu.core_type = #tpu.core_type<tc>} {
    %c0 = arith.constant 0 : index
    %c0_0 = arith.constant 0 : index
    %0 = vector.load %arg0[%c0, %c0_0] : memref<8x128xf32, #tpu.memory_space<vmem>>, vector<8x128xf32>
    %c0_1 = arith.constant 0 : index
    %c0_2 = arith.constant 0 : index
    %1 = vector.load %arg1[%c0_1, %c0_2] : memref<8x2xi32, #tpu.memory_space<vmem>>, vector<8x2xi32>
    %c0_3 = arith.constant 0 : index
    %c0_4 = arith.constant 0 : index
    %2 = vector.load %arg2[%c0_3, %c0_4] : memref<1x128xf32, #tpu.memory_space<vmem>>, vector<1x128xf32>
    %3 = vector.extract_strided_slice %2 {offsets = [0, 0], sizes = [1, 8], strides = [1, 1]} : vector<1x128xf32> to vector<1x8xf32>
    %4 = vector.extract_strided_slice %2 {offsets = [0, 8], sizes = [1, 8], strides = [1, 1]} : vector<1x128xf32> to vector<1x8xf32>
    %5 = vector.extract_strided_slice %2 {offsets = [0, 16], sizes = [1, 8], strides = [1, 1]} : vector<1x128xf32> to vector<1x8xf32>
    %6 = tpu.iota {dimensions = array<i32: 1>} : vector<8x12xi32>
    %7 = tpu.iota {dimensions = array<i32: 1>} : vector<8x8xi32>
    %8 = vector.extract_strided_slice %1 {offsets = [0, 0], sizes = [8, 1], strides = [1, 1]} : vector<8x2xi32> to vector<8x1xi32>
    %9 = vector.broadcast %8 : vector<8x1xi32> to vector<8x12xi32>
    %10 = arith.cmpi eq, %6, %9 : vector<8x12xi32>
    %11 = arith.extui %10 : vector<8x12xi1> to vector<8x12xi32>
    %12 = arith.sitofp %11 : vector<8x12xi32> to vector<8x12xf32>
    %13 = vector.extract_strided_slice %1 {offsets = [0, 1], sizes = [8, 1], strides = [1, 1]} : vector<8x2xi32> to vector<8x1xi32>
    %14 = vector.broadcast %13 : vector<8x1xi32> to vector<8x8xi32>
    %15 = arith.cmpi eq, %7, %14 : vector<8x8xi32>
    %16 = arith.extui %15 : vector<8x8xi1> to vector<8x8xi32>
    %17 = arith.sitofp %16 : vector<8x8xi32> to vector<8x8xf32>
    %18 = arith.sitofp %6 : vector<8x12xi32> to vector<8x12xf32>
    %cst = arith.constant 0.52359879 : f32
    %19 = vector.broadcast %cst : f32 to vector<8x12xf32>
    %20 = arith.mulf %18, %19 : vector<8x12xf32>
    %21 = tpu.iota {dimensions = array<i32: 1>} : vector<8x8xi32>
    %c1_i32 = arith.constant 1 : i32
    %22 = vector.broadcast %c1_i32 : i32 to vector<8x8xi32>
    %23 = arith.shrsi %21, %22 : vector<8x8xi32>
    %c1_i32_5 = arith.constant 1 : i32
    %24 = vector.broadcast %c1_i32_5 : i32 to vector<8x8xi32>
    %25 = arith.andi %23, %24 : vector<8x8xi32>
    %c2_i32 = arith.constant 2 : i32
    %26 = vector.broadcast %c2_i32 : i32 to vector<8x8xi32>
    %27 = arith.muli %26, %25 : vector<8x8xi32>
    %c1_i32_6 = arith.constant 1 : i32
    %28 = vector.broadcast %c1_i32_6 : i32 to vector<8x8xi32>
    %29 = arith.subi %28, %27 : vector<8x8xi32>
    %30 = arith.sitofp %29 : vector<8x8xi32> to vector<8x8xf32>
    %c2_i32_7 = arith.constant 2 : i32
    %31 = vector.broadcast %c2_i32_7 : i32 to vector<8x8xi32>
    %32 = arith.shrsi %21, %31 : vector<8x8xi32>
    %c1_i32_8 = arith.constant 1 : i32
    %33 = vector.broadcast %c1_i32_8 : i32 to vector<8x8xi32>
    %34 = arith.andi %32, %33 : vector<8x8xi32>
    %c2_i32_9 = arith.constant 2 : i32
    %35 = vector.broadcast %c2_i32_9 : i32 to vector<8x8xi32>
    %36 = arith.muli %35, %34 : vector<8x8xi32>
    %c1_i32_10 = arith.constant 1 : i32
    %37 = vector.broadcast %c1_i32_10 : i32 to vector<8x8xi32>
    %38 = arith.subi %37, %36 : vector<8x8xi32>
    %39 = arith.sitofp %38 : vector<8x8xi32> to vector<8x8xf32>
    %c1_i32_11 = arith.constant 1 : i32
    %40 = vector.broadcast %c1_i32_11 : i32 to vector<8x8xi32>
    %41 = arith.addi %21, %40 : vector<8x8xi32>
    %c1_i32_12 = arith.constant 1 : i32
    %42 = vector.broadcast %c1_i32_12 : i32 to vector<8x8xi32>
    %43 = arith.shrsi %41, %42 : vector<8x8xi32>
    %c1_i32_13 = arith.constant 1 : i32
    %44 = vector.broadcast %c1_i32_13 : i32 to vector<8x8xi32>
    %45 = arith.andi %43, %44 : vector<8x8xi32>
    %c2_i32_14 = arith.constant 2 : i32
    %46 = vector.broadcast %c2_i32_14 : i32 to vector<8x8xi32>
    %47 = arith.muli %46, %45 : vector<8x8xi32>
    %c1_i32_15 = arith.constant 1 : i32
    %48 = vector.broadcast %c1_i32_15 : i32 to vector<8x8xi32>
    %49 = arith.subi %48, %47 : vector<8x8xi32>
    %50 = arith.sitofp %49 : vector<8x8xi32> to vector<8x8xf32>
    %51 = vector.extract_strided_slice %0 {offsets = [0, 0], sizes = [8, 3], strides = [1, 1]} : vector<8x128xf32> to vector<8x3xf32>
    %52 = vector.extract_strided_slice %0 {offsets = [0, 3], sizes = [8, 3], strides = [1, 1]} : vector<8x128xf32> to vector<8x3xf32>
    %53 = vector.extract_strided_slice %0 {offsets = [0, 6], sizes = [8, 3], strides = [1, 1]} : vector<8x128xf32> to vector<8x3xf32>
    %54 = arith.subf %51, %52 : vector<8x3xf32>
    %55 = math.absf %54 : vector<8x3xf32>
    %cst_16 = arith.constant dense<0.000000e+00> : vector<8xf32>
    %56 = vector.multi_reduction <add>, %55, %cst_16 [1] : vector<8x3xf32> to vector<8xf32>
    %57 = vector.shape_cast %56 : vector<8xf32> to vector<8x1xf32>
    %58 = math.absf %57 : vector<8x1xf32>
    %cst_17 = arith.constant 2.000000e+00 : f32
    %59 = vector.broadcast %cst_17 : f32 to vector<8x1xf32>
    %60 = arith.minimumf %58, %59 : vector<8x1xf32>
    %61 = arith.subf %58, %60 : vector<8x1xf32>
    %cst_18 = arith.constant 5.000000e-01 : f32
    %62 = vector.broadcast %cst_18 : f32 to vector<8x1xf32>
    %63 = arith.mulf %62, %60 : vector<8x1xf32>
    %64 = arith.mulf %63, %60 : vector<8x1xf32>
    %cst_19 = arith.constant 2.000000e+00 : f32
    %65 = vector.broadcast %cst_19 : f32 to vector<8x1xf32>
    %66 = arith.mulf %65, %61 : vector<8x1xf32>
    %67 = arith.addf %64, %66 : vector<8x1xf32>
    %68 = vector.shape_cast %67 : vector<8x1xf32> to vector<1x8x1xf32>
    %cst_20 = arith.constant dense<0.000000e+00> : vector<1xf32>
    %69 = vector.multi_reduction <add>, %68, %cst_20 [1, 2] : vector<1x8x1xf32> to vector<1xf32>
    %70 = vector.shape_cast %69 : vector<1xf32> to vector<1x1x1xf32>
    %71 = vector.extract %70[0, 0, 0] : f32 from vector<1x1x1xf32>
    %cst_21 = arith.constant 1.250000e-01 : f32
    %72 = arith.mulf %71, %cst_21 : f32
    %73 = arith.subf %51, %53 : vector<8x3xf32>
    %74 = math.absf %73 : vector<8x3xf32>
    %cst_22 = arith.constant dense<0.000000e+00> : vector<8xf32>
    %75 = vector.multi_reduction <add>, %74, %cst_22 [1] : vector<8x3xf32> to vector<8xf32>
    %76 = vector.shape_cast %75 : vector<8xf32> to vector<8x1xf32>
    %77 = math.absf %76 : vector<8x1xf32>
    %cst_23 = arith.constant 1.000000e+00 : f32
    %78 = vector.broadcast %cst_23 : f32 to vector<8x1xf32>
    %79 = arith.minimumf %77, %78 : vector<8x1xf32>
    %80 = arith.subf %77, %79 : vector<8x1xf32>
    %cst_24 = arith.constant 5.000000e-01 : f32
    %81 = vector.broadcast %cst_24 : f32 to vector<8x1xf32>
    %82 = arith.mulf %81, %79 : vector<8x1xf32>
    %83 = arith.mulf %82, %79 : vector<8x1xf32>
    %cst_25 = arith.constant 1.000000e+00 : f32
    %84 = vector.broadcast %cst_25 : f32 to vector<8x1xf32>
    %85 = arith.mulf %84, %80 : vector<8x1xf32>
    %86 = arith.addf %83, %85 : vector<8x1xf32>
    %87 = vector.shape_cast %86 : vector<8x1xf32> to vector<1x8x1xf32>
    %cst_26 = arith.constant dense<0.000000e+00> : vector<1xf32>
    %88 = vector.multi_reduction <add>, %87, %cst_26 [1, 2] : vector<1x8x1xf32> to vector<1xf32>
    %89 = vector.shape_cast %88 : vector<1xf32> to vector<1x1x1xf32>
    %90 = vector.extract %89[0, 0, 0] : f32 from vector<1x1x1xf32>
    %cst_27 = arith.constant 1.250000e-01 : f32
    %91 = arith.mulf %90, %cst_27 : f32
    %92 = vector.extract_strided_slice %0 {offsets = [0, 9], sizes = [8, 12], strides = [1, 1]} : vector<8x128xf32> to vector<8x12xf32>
    %cst_28 = arith.constant dense<0xFF800000> : vector<8xf32>
    %93 = vector.multi_reduction <maximumf>, %92, %cst_28 [1] : vector<8x12xf32> to vector<8xf32>
    %94 = vector.shape_cast %93 : vector<8xf32> to vector<8x1xf32>
    %95 = vector.broadcast %94 : vector<8x1xf32> to vector<8x12xf32>
    %96 = arith.subf %92, %95 : vector<8x12xf32>
    %97 = math.exp %96 : vector<8x12xf32>
    %cst_29 = arith.constant dense<0.000000e+00> : vector<8xf32>
    %98 = vector.multi_reduction <add>, %97, %cst_29 [1] : vector<8x12xf32> to vector<8xf32>
    %99 = vector.shape_cast %98 : vector<8xf32> to vector<8x1xf32>
    %100 = math.log %99 : vector<8x1xf32>
    %101 = arith.addf %94, %100 : vector<8x1xf32>
    %102 = arith.mulf %92, %12 : vector<8x12xf32>
    %cst_30 = arith.constant dense<0.000000e+00> : vector<8xf32>
    %103 = vector.multi_reduction <add>, %102, %cst_30 [1] : vector<8x12xf32> to vector<8xf32>
    %104 = vector.shape_cast %103 : vector<8xf32> to vector<8x1xf32>
    %105 = arith.subf %101, %104 : vector<8x1xf32>
    %106 = vector.shape_cast %105 : vector<8x1xf32> to vector<1x8x1xf32>
    %cst_31 = arith.constant dense<0.000000e+00> : vector<1xf32>
    %107 = vector.multi_reduction <add>, %106, %cst_31 [1, 2] : vector<1x8x1xf32> to vector<1xf32>
    %108 = vector.shape_cast %107 : vector<1xf32> to vector<1x1x1xf32>
    %109 = vector.extract %108[0, 0, 0] : f32 from vector<1x1x1xf32>
    %cst_32 = arith.constant 1.250000e-01 : f32
    %110 = arith.mulf %109, %cst_32 : f32
    %111 = vector.extract_strided_slice %0 {offsets = [0, 104], sizes = [8, 1], strides = [1, 1]} : vector<8x128xf32> to vector<8x1xf32>
    %112 = vector.extract_strided_slice %0 {offsets = [0, 21], sizes = [8, 12], strides = [1, 1]} : vector<8x128xf32> to vector<8x12xf32>
    %113 = arith.mulf %112, %12 : vector<8x12xf32>
    %cst_33 = arith.constant dense<0.000000e+00> : vector<8xf32>
    %114 = vector.multi_reduction <add>, %113, %cst_33 [1] : vector<8x12xf32> to vector<8xf32>
    %115 = vector.shape_cast %114 : vector<8xf32> to vector<8x1xf32>
    %cst_34 = arith.constant 0.261799395 : f32
    %116 = vector.broadcast %cst_34 : f32 to vector<8x1xf32>
    %117 = arith.divf %111, %116 : vector<8x1xf32>
    %118 = arith.subf %115, %117 : vector<8x1xf32>
    %119 = math.absf %118 : vector<8x1xf32>
    %cst_35 = arith.constant 1.000000e+00 : f32
    %120 = vector.broadcast %cst_35 : f32 to vector<8x1xf32>
    %121 = arith.minimumf %119, %120 : vector<8x1xf32>
    %122 = arith.subf %119, %121 : vector<8x1xf32>
    %cst_36 = arith.constant 5.000000e-01 : f32
    %123 = vector.broadcast %cst_36 : f32 to vector<8x1xf32>
    %124 = arith.mulf %123, %121 : vector<8x1xf32>
    %125 = arith.mulf %124, %121 : vector<8x1xf32>
    %cst_37 = arith.constant 1.000000e+00 : f32
    %126 = vector.broadcast %cst_37 : f32 to vector<8x1xf32>
    %127 = arith.mulf %126, %122 : vector<8x1xf32>
    %128 = arith.addf %125, %127 : vector<8x1xf32>
    %129 = vector.shape_cast %128 : vector<8x1xf32> to vector<1x8x1xf32>
    %cst_38 = arith.constant dense<0.000000e+00> : vector<1xf32>
    %130 = vector.multi_reduction <add>, %129, %cst_38 [1, 2] : vector<1x8x1xf32> to vector<1xf32>
    %131 = vector.shape_cast %130 : vector<1xf32> to vector<1x1x1xf32>
    %132 = vector.extract %131[0, 0, 0] : f32 from vector<1x1x1xf32>
    %cst_39 = arith.constant 1.250000e-01 : f32
    %133 = arith.mulf %132, %cst_39 : f32
    %134 = vector.extract_strided_slice %0 {offsets = [0, 45], sizes = [8, 8], strides = [1, 1]} : vector<8x128xf32> to vector<8x8xf32>
    %cst_40 = arith.constant dense<0xFF800000> : vector<8xf32>
    %135 = vector.multi_reduction <maximumf>, %134, %cst_40 [1] : vector<8x8xf32> to vector<8xf32>
    %136 = vector.shape_cast %135 : vector<8xf32> to vector<8x1xf32>
    %137 = vector.broadcast %136 : vector<8x1xf32> to vector<8x8xf32>
    %138 = arith.subf %134, %137 : vector<8x8xf32>
    %139 = math.exp %138 : vector<8x8xf32>
    %cst_41 = arith.constant dense<0.000000e+00> : vector<8xf32>
    %140 = vector.multi_reduction <add>, %139, %cst_41 [1] : vector<8x8xf32> to vector<8xf32>
    %141 = vector.shape_cast %140 : vector<8xf32> to vector<8x1xf32>
    %142 = math.log %141 : vector<8x1xf32>
    %143 = arith.addf %136, %142 : vector<8x1xf32>
    %144 = arith.mulf %134, %17 : vector<8x8xf32>
    %cst_42 = arith.constant dense<0.000000e+00> : vector<8xf32>
    %145 = vector.multi_reduction <add>, %144, %cst_42 [1] : vector<8x8xf32> to vector<8xf32>
    %146 = vector.shape_cast %145 : vector<8xf32> to vector<8x1xf32>
    %147 = arith.subf %143, %146 : vector<8x1xf32>
    %148 = vector.shape_cast %147 : vector<8x1xf32> to vector<1x8x1xf32>
    %cst_43 = arith.constant dense<0.000000e+00> : vector<1xf32>
    %149 = vector.multi_reduction <add>, %148, %cst_43 [1, 2] : vector<1x8x1xf32> to vector<1xf32>
    %150 = vector.shape_cast %149 : vector<1xf32> to vector<1x1x1xf32>
    %151 = vector.extract %150[0, 0, 0] : f32 from vector<1x1x1xf32>
    %cst_44 = arith.constant 1.250000e-01 : f32
    %152 = arith.mulf %151, %cst_44 : f32
    %153 = vector.broadcast %3 : vector<1x8xf32> to vector<8x8xf32>
    %154 = arith.mulf %17, %153 : vector<8x8xf32>
    %cst_45 = arith.constant dense<0.000000e+00> : vector<8xf32>
    %155 = vector.multi_reduction <add>, %154, %cst_45 [1] : vector<8x8xf32> to vector<8xf32>
    %156 = vector.shape_cast %155 : vector<8xf32> to vector<8x1xf32>
    %157 = vector.broadcast %4 : vector<1x8xf32> to vector<8x8xf32>
    %158 = arith.mulf %17, %157 : vector<8x8xf32>
    %cst_46 = arith.constant dense<0.000000e+00> : vector<8xf32>
    %159 = vector.multi_reduction <add>, %158, %cst_46 [1] : vector<8x8xf32> to vector<8xf32>
    %160 = vector.shape_cast %159 : vector<8xf32> to vector<8x1xf32>
    %161 = vector.broadcast %5 : vector<1x8xf32> to vector<8x8xf32>
    %162 = arith.mulf %17, %161 : vector<8x8xf32>
    %cst_47 = arith.constant dense<0.000000e+00> : vector<8xf32>
    %163 = vector.multi_reduction <add>, %162, %cst_47 [1] : vector<8x8xf32> to vector<8xf32>
    %164 = vector.shape_cast %163 : vector<8xf32> to vector<8x1xf32>
    %165 = vector.extract_strided_slice %0 {offsets = [0, 53], sizes = [8, 8], strides = [1, 1]} : vector<8x128xf32> to vector<8x8xf32>
    %166 = arith.mulf %165, %17 : vector<8x8xf32>
    %cst_48 = arith.constant dense<0.000000e+00> : vector<8xf32>
    %167 = vector.multi_reduction <add>, %166, %cst_48 [1] : vector<8x8xf32> to vector<8xf32>
    %168 = vector.shape_cast %167 : vector<8xf32> to vector<8x1xf32>
    %169 = vector.extract_strided_slice %0 {offsets = [0, 61], sizes = [8, 8], strides = [1, 1]} : vector<8x128xf32> to vector<8x8xf32>
    %170 = arith.mulf %169, %17 : vector<8x8xf32>
    %cst_49 = arith.constant dense<0.000000e+00> : vector<8xf32>
    %171 = vector.multi_reduction <add>, %170, %cst_49 [1] : vector<8x8xf32> to vector<8xf32>
    %172 = vector.shape_cast %171 : vector<8xf32> to vector<8x1xf32>
    %173 = vector.extract_strided_slice %0 {offsets = [0, 69], sizes = [8, 8], strides = [1, 1]} : vector<8x128xf32> to vector<8x8xf32>
    %174 = arith.mulf %173, %17 : vector<8x8xf32>
    %cst_50 = arith.constant dense<0.000000e+00> : vector<8xf32>
    %175 = vector.multi_reduction <add>, %174, %cst_50 [1] : vector<8x8xf32> to vector<8xf32>
    %176 = vector.shape_cast %175 : vector<8xf32> to vector<8x1xf32>
    %177 = vector.extract_strided_slice %0 {offsets = [0, 101], sizes = [8, 3], strides = [1, 1]} : vector<8x128xf32> to vector<8x3xf32>
    %178 = vector.extract_strided_slice %177 {offsets = [0, 0], sizes = [8, 1], strides = [1, 1]} : vector<8x3xf32> to vector<8x1xf32>
    %179 = arith.divf %178, %156 : vector<8x1xf32>
    %180 = arith.subf %179, %168 : vector<8x1xf32>
    %181 = math.absf %180 : vector<8x1xf32>
    %182 = vector.extract_strided_slice %177 {offsets = [0, 1], sizes = [8, 1], strides = [1, 1]} : vector<8x3xf32> to vector<8x1xf32>
    %183 = arith.divf %182, %160 : vector<8x1xf32>
    %184 = arith.subf %183, %172 : vector<8x1xf32>
    %185 = math.absf %184 : vector<8x1xf32>
    %186 = arith.addf %181, %185 : vector<8x1xf32>
    %187 = vector.extract_strided_slice %177 {offsets = [0, 2], sizes = [8, 1], strides = [1, 1]} : vector<8x3xf32> to vector<8x1xf32>
    %188 = arith.divf %187, %164 : vector<8x1xf32>
    %189 = arith.subf %188, %176 : vector<8x1xf32>
    %190 = math.absf %189 : vector<8x1xf32>
    %191 = arith.addf %186, %190 : vector<8x1xf32>
    %192 = math.absf %191 : vector<8x1xf32>
    %cst_51 = arith.constant 1.000000e+00 : f32
    %193 = vector.broadcast %cst_51 : f32 to vector<8x1xf32>
    %194 = arith.minimumf %192, %193 : vector<8x1xf32>
    %195 = arith.subf %192, %194 : vector<8x1xf32>
    %cst_52 = arith.constant 5.000000e-01 : f32
    %196 = vector.broadcast %cst_52 : f32 to vector<8x1xf32>
    %197 = arith.mulf %196, %194 : vector<8x1xf32>
    %198 = arith.mulf %197, %194 : vector<8x1xf32>
    %cst_53 = arith.constant 1.000000e+00 : f32
    %199 = vector.broadcast %cst_53 : f32 to vector<8x1xf32>
    %200 = arith.mulf %199, %195 : vector<8x1xf32>
    %201 = arith.addf %198, %200 : vector<8x1xf32>
    %202 = vector.shape_cast %201 : vector<8x1xf32> to vector<1x8x1xf32>
    %cst_54 = arith.constant dense<0.000000e+00> : vector<1xf32>
    %203 = vector.multi_reduction <add>, %202, %cst_54 [1, 2] : vector<1x8x1xf32> to vector<1xf32>
    %204 = vector.shape_cast %203 : vector<1xf32> to vector<1x1x1xf32>
    %205 = vector.extract %204[0, 0, 0] : f32 from vector<1x1x1xf32>
    %cst_55 = arith.constant 1.250000e-01 : f32
    %206 = arith.mulf %205, %cst_55 : f32
    %207 = arith.mulf %12, %20 : vector<8x12xf32>
    %cst_56 = arith.constant dense<0.000000e+00> : vector<8xf32>
    %208 = vector.multi_reduction <add>, %207, %cst_56 [1] : vector<8x12xf32> to vector<8xf32>
    %209 = vector.shape_cast %208 : vector<8xf32> to vector<8x1xf32>
    %210 = vector.extract_strided_slice %0 {offsets = [0, 33], sizes = [8, 12], strides = [1, 1]} : vector<8x128xf32> to vector<8x12xf32>
    %211 = arith.mulf %12, %210 : vector<8x12xf32>
    %cst_57 = arith.constant dense<0.000000e+00> : vector<8xf32>
    %212 = vector.multi_reduction <add>, %211, %cst_57 [1] : vector<8x12xf32> to vector<8xf32>
    %213 = vector.shape_cast %212 : vector<8xf32> to vector<8x1xf32>
    %214 = arith.addf %213, %209 : vector<8x1xf32>
    %215 = arith.addf %111, %209 : vector<8x1xf32>
    %216 = vector.extract_strided_slice %0 {offsets = [0, 77], sizes = [8, 8], strides = [1, 1]} : vector<8x128xf32> to vector<8x8xf32>
    %217 = arith.mulf %17, %216 : vector<8x8xf32>
    %cst_58 = arith.constant dense<0.000000e+00> : vector<8xf32>
    %218 = vector.multi_reduction <add>, %217, %cst_58 [1] : vector<8x8xf32> to vector<8xf32>
    %219 = vector.shape_cast %218 : vector<8xf32> to vector<8x1xf32>
    %220 = arith.addf %156, %219 : vector<8x1xf32>
    %221 = vector.extract_strided_slice %0 {offsets = [0, 85], sizes = [8, 8], strides = [1, 1]} : vector<8x128xf32> to vector<8x8xf32>
    %222 = arith.mulf %17, %221 : vector<8x8xf32>
    %cst_59 = arith.constant dense<0.000000e+00> : vector<8xf32>
    %223 = vector.multi_reduction <add>, %222, %cst_59 [1] : vector<8x8xf32> to vector<8xf32>
    %224 = vector.shape_cast %223 : vector<8xf32> to vector<8x1xf32>
    %225 = arith.addf %160, %224 : vector<8x1xf32>
    %226 = vector.extract_strided_slice %0 {offsets = [0, 93], sizes = [8, 8], strides = [1, 1]} : vector<8x128xf32> to vector<8x8xf32>
    %227 = arith.mulf %17, %226 : vector<8x8xf32>
    %cst_60 = arith.constant dense<0.000000e+00> : vector<8xf32>
    %228 = vector.multi_reduction <add>, %227, %cst_60 [1] : vector<8x8xf32> to vector<8xf32>
    %229 = vector.shape_cast %228 : vector<8xf32> to vector<8x1xf32>
    %230 = arith.addf %164, %229 : vector<8x1xf32>
    %231 = vector.extract_strided_slice %177 {offsets = [0, 0], sizes = [8, 1], strides = [1, 1]} : vector<8x3xf32> to vector<8x1xf32>
    %232 = arith.addf %156, %231 : vector<8x1xf32>
    %233 = vector.extract_strided_slice %177 {offsets = [0, 1], sizes = [8, 1], strides = [1, 1]} : vector<8x3xf32> to vector<8x1xf32>
    %234 = arith.addf %160, %233 : vector<8x1xf32>
    %235 = vector.extract_strided_slice %177 {offsets = [0, 2], sizes = [8, 1], strides = [1, 1]} : vector<8x3xf32> to vector<8x1xf32>
    %236 = arith.addf %164, %235 : vector<8x1xf32>
    %237 = vector.extract_strided_slice %52 {offsets = [0, 0], sizes = [8, 1], strides = [1, 1]} : vector<8x3xf32> to vector<8x1xf32>
    %238 = vector.extract_strided_slice %52 {offsets = [0, 1], sizes = [8, 1], strides = [1, 1]} : vector<8x3xf32> to vector<8x1xf32>
    %239 = vector.extract_strided_slice %52 {offsets = [0, 2], sizes = [8, 1], strides = [1, 1]} : vector<8x3xf32> to vector<8x1xf32>
    %cst_61 = arith.constant 5.000000e-01 : f32
    %240 = vector.broadcast %cst_61 : f32 to vector<8x1xf32>
    %241 = arith.mulf %240, %220 : vector<8x1xf32>
    %242 = vector.broadcast %241 : vector<8x1xf32> to vector<8x8xf32>
    %243 = arith.mulf %242, %30 : vector<8x8xf32>
    %cst_62 = arith.constant 5.000000e-01 : f32
    %244 = vector.broadcast %cst_62 : f32 to vector<8x1xf32>
    %245 = arith.mulf %244, %230 : vector<8x1xf32>
    %246 = vector.broadcast %245 : vector<8x1xf32> to vector<8x8xf32>
    %247 = arith.mulf %246, %39 : vector<8x8xf32>
    %cst_63 = arith.constant 5.000000e-01 : f32
    %248 = vector.broadcast %cst_63 : f32 to vector<8x1xf32>
    %249 = arith.mulf %248, %225 : vector<8x1xf32>
    %250 = vector.broadcast %249 : vector<8x1xf32> to vector<8x8xf32>
    %251 = arith.mulf %250, %50 : vector<8x8xf32>
    %252 = math.cos %214 : vector<8x1xf32>
    %253 = math.sin %214 : vector<8x1xf32>
    %254 = vector.broadcast %252 : vector<8x1xf32> to vector<8x8xf32>
    %255 = arith.mulf %254, %243 : vector<8x8xf32>
    %256 = vector.broadcast %253 : vector<8x1xf32> to vector<8x8xf32>
    %257 = arith.mulf %256, %251 : vector<8x8xf32>
    %258 = arith.addf %255, %257 : vector<8x8xf32>
    %259 = vector.broadcast %237 : vector<8x1xf32> to vector<8x8xf32>
    %260 = arith.addf %258, %259 : vector<8x8xf32>
    %261 = vector.broadcast %238 : vector<8x1xf32> to vector<8x8xf32>
    %262 = arith.addf %247, %261 : vector<8x8xf32>
    %cst_64 = arith.constant 0.000000e+00 : f32
    %263 = vector.broadcast %cst_64 : f32 to vector<8x1xf32>
    %264 = arith.subf %263, %253 : vector<8x1xf32>
    %265 = vector.broadcast %264 : vector<8x1xf32> to vector<8x8xf32>
    %266 = arith.mulf %265, %243 : vector<8x8xf32>
    %267 = vector.broadcast %252 : vector<8x1xf32> to vector<8x8xf32>
    %268 = arith.mulf %267, %251 : vector<8x8xf32>
    %269 = arith.addf %266, %268 : vector<8x8xf32>
    %270 = vector.broadcast %239 : vector<8x1xf32> to vector<8x8xf32>
    %271 = arith.addf %269, %270 : vector<8x8xf32>
    %272 = vector.extract_strided_slice %51 {offsets = [0, 0], sizes = [8, 1], strides = [1, 1]} : vector<8x3xf32> to vector<8x1xf32>
    %273 = vector.extract_strided_slice %51 {offsets = [0, 1], sizes = [8, 1], strides = [1, 1]} : vector<8x3xf32> to vector<8x1xf32>
    %274 = vector.extract_strided_slice %51 {offsets = [0, 2], sizes = [8, 1], strides = [1, 1]} : vector<8x3xf32> to vector<8x1xf32>
    %cst_65 = arith.constant 5.000000e-01 : f32
    %275 = vector.broadcast %cst_65 : f32 to vector<8x1xf32>
    %276 = arith.mulf %275, %232 : vector<8x1xf32>
    %277 = vector.broadcast %276 : vector<8x1xf32> to vector<8x8xf32>
    %278 = arith.mulf %277, %30 : vector<8x8xf32>
    %cst_66 = arith.constant 5.000000e-01 : f32
    %279 = vector.broadcast %cst_66 : f32 to vector<8x1xf32>
    %280 = arith.mulf %279, %236 : vector<8x1xf32>
    %281 = vector.broadcast %280 : vector<8x1xf32> to vector<8x8xf32>
    %282 = arith.mulf %281, %39 : vector<8x8xf32>
    %cst_67 = arith.constant 5.000000e-01 : f32
    %283 = vector.broadcast %cst_67 : f32 to vector<8x1xf32>
    %284 = arith.mulf %283, %234 : vector<8x1xf32>
    %285 = vector.broadcast %284 : vector<8x1xf32> to vector<8x8xf32>
    %286 = arith.mulf %285, %50 : vector<8x8xf32>
    %287 = math.cos %215 : vector<8x1xf32>
    %288 = math.sin %215 : vector<8x1xf32>
    %289 = vector.broadcast %287 : vector<8x1xf32> to vector<8x8xf32>
    %290 = arith.mulf %289, %278 : vector<8x8xf32>
    %291 = vector.broadcast %288 : vector<8x1xf32> to vector<8x8xf32>
    %292 = arith.mulf %291, %286 : vector<8x8xf32>
    %293 = arith.addf %290, %292 : vector<8x8xf32>
    %294 = vector.broadcast %272 : vector<8x1xf32> to vector<8x8xf32>
    %295 = arith.addf %293, %294 : vector<8x8xf32>
    %296 = vector.broadcast %273 : vector<8x1xf32> to vector<8x8xf32>
    %297 = arith.addf %282, %296 : vector<8x8xf32>
    %cst_68 = arith.constant 0.000000e+00 : f32
    %298 = vector.broadcast %cst_68 : f32 to vector<8x1xf32>
    %299 = arith.subf %298, %288 : vector<8x1xf32>
    %300 = vector.broadcast %299 : vector<8x1xf32> to vector<8x8xf32>
    %301 = arith.mulf %300, %278 : vector<8x8xf32>
    %302 = vector.broadcast %287 : vector<8x1xf32> to vector<8x8xf32>
    %303 = arith.mulf %302, %286 : vector<8x8xf32>
    %304 = arith.addf %301, %303 : vector<8x8xf32>
    %305 = vector.broadcast %274 : vector<8x1xf32> to vector<8x8xf32>
    %306 = arith.addf %304, %305 : vector<8x8xf32>
    %307 = arith.subf %262, %297 : vector<8x8xf32>
    %308 = math.absf %307 : vector<8x8xf32>
    %309 = arith.subf %260, %295 : vector<8x8xf32>
    %310 = math.absf %309 : vector<8x8xf32>
    %311 = arith.addf %310, %308 : vector<8x8xf32>
    %312 = arith.subf %271, %306 : vector<8x8xf32>
    %313 = math.absf %312 : vector<8x8xf32>
    %314 = arith.addf %311, %313 : vector<8x8xf32>
    %315 = arith.addf %260, %295 : vector<8x8xf32>
    %cst_69 = arith.constant 2.000000e+00 : f32
    %316 = vector.broadcast %cst_69 : f32 to vector<8x1xf32>
    %317 = arith.mulf %316, %272 : vector<8x1xf32>
    %318 = vector.broadcast %317 : vector<8x1xf32> to vector<8x8xf32>
    %319 = arith.subf %315, %318 : vector<8x8xf32>
    %320 = math.absf %319 : vector<8x8xf32>
    %321 = arith.addf %320, %308 : vector<8x8xf32>
    %322 = arith.addf %271, %306 : vector<8x8xf32>
    %cst_70 = arith.constant 2.000000e+00 : f32
    %323 = vector.broadcast %cst_70 : f32 to vector<8x1xf32>
    %324 = arith.mulf %323, %274 : vector<8x1xf32>
    %325 = vector.broadcast %324 : vector<8x1xf32> to vector<8x8xf32>
    %326 = arith.subf %322, %325 : vector<8x8xf32>
    %327 = math.absf %326 : vector<8x8xf32>
    %328 = arith.addf %321, %327 : vector<8x8xf32>
    %329 = arith.minimumf %314, %328 : vector<8x8xf32>
    %330 = math.absf %329 : vector<8x8xf32>
    %cst_71 = arith.constant 1.000000e+00 : f32
    %331 = vector.broadcast %cst_71 : f32 to vector<8x8xf32>
    %332 = arith.minimumf %330, %331 : vector<8x8xf32>
    %333 = arith.subf %330, %332 : vector<8x8xf32>
    %cst_72 = arith.constant 5.000000e-01 : f32
    %334 = vector.broadcast %cst_72 : f32 to vector<8x8xf32>
    %335 = arith.mulf %334, %332 : vector<8x8xf32>
    %336 = arith.mulf %335, %332 : vector<8x8xf32>
    %cst_73 = arith.constant 1.000000e+00 : f32
    %337 = vector.broadcast %cst_73 : f32 to vector<8x8xf32>
    %338 = arith.mulf %337, %333 : vector<8x8xf32>
    %339 = arith.addf %336, %338 : vector<8x8xf32>
    %340 = vector.shape_cast %339 : vector<8x8xf32> to vector<1x8x8xf32>
    %cst_74 = arith.constant dense<0.000000e+00> : vector<1xf32>
    %341 = vector.multi_reduction <add>, %340, %cst_74 [1, 2] : vector<1x8x8xf32> to vector<1xf32>
    %342 = vector.shape_cast %341 : vector<1xf32> to vector<1x1x1xf32>
    %343 = vector.extract %342[0, 0, 0] : f32 from vector<1x1x1xf32>
    %cst_75 = arith.constant 1.562500e-02 : f32
    %344 = arith.mulf %343, %cst_75 : f32
    %345 = arith.addf %72, %110 : f32
    %346 = arith.addf %345, %152 : f32
    %cst_76 = arith.constant 2.000000e+01 : f32
    %347 = arith.mulf %133, %cst_76 : f32
    %348 = arith.addf %346, %347 : f32
    %cst_77 = arith.constant 2.000000e+01 : f32
    %349 = arith.mulf %206, %cst_77 : f32
    %350 = arith.addf %348, %349 : f32
    %351 = arith.addf %350, %91 : f32
    %cst_78 = arith.constant 1.000000e+01 : f32
    %352 = arith.mulf %cst_78, %344 : f32
    %353 = arith.addf %351, %352 : f32
    %cst_79 = arith.constant 1.000000e+00 : f32
    %354 = arith.mulf %cst_79, %353 : f32
    %c0_80 = arith.constant 0 : index
    %355 = memref.load %arg3[%c0_80] : memref<8xf32, #tpu.memory_space<smem>>
    memref.store %72, %arg3[%c0_80] : memref<8xf32, #tpu.memory_space<smem>>
    %c1 = arith.constant 1 : index
    %356 = memref.load %arg3[%c1] : memref<8xf32, #tpu.memory_space<smem>>
    memref.store %91, %arg3[%c1] : memref<8xf32, #tpu.memory_space<smem>>
    %c2 = arith.constant 2 : index
    %357 = memref.load %arg3[%c2] : memref<8xf32, #tpu.memory_space<smem>>
    memref.store %110, %arg3[%c2] : memref<8xf32, #tpu.memory_space<smem>>
    %c3 = arith.constant 3 : index
    %358 = memref.load %arg3[%c3] : memref<8xf32, #tpu.memory_space<smem>>
    memref.store %133, %arg3[%c3] : memref<8xf32, #tpu.memory_space<smem>>
    %c4 = arith.constant 4 : index
    %359 = memref.load %arg3[%c4] : memref<8xf32, #tpu.memory_space<smem>>
    memref.store %152, %arg3[%c4] : memref<8xf32, #tpu.memory_space<smem>>
    %c5 = arith.constant 5 : index
    %360 = memref.load %arg3[%c5] : memref<8xf32, #tpu.memory_space<smem>>
    memref.store %206, %arg3[%c5] : memref<8xf32, #tpu.memory_space<smem>>
    %c6 = arith.constant 6 : index
    %361 = memref.load %arg3[%c6] : memref<8xf32, #tpu.memory_space<smem>>
    memref.store %344, %arg3[%c6] : memref<8xf32, #tpu.memory_space<smem>>
    %c7 = arith.constant 7 : index
    %362 = memref.load %arg3[%c7] : memref<8xf32, #tpu.memory_space<smem>>
    memref.store %354, %arg3[%c7] : memref<8xf32, #tpu.memory_space<smem>>
    return
  }
}

</mosaic_0001>

<bundles_post_ra>
// kernel: tpu_custom_call.1
= control target key start
LH: loop header
LB: loop body
LE: loop exit
PB: predicated region body
PF: predicated region fallthrough
CT: control target
= control target key end

     0   :  { %v1076_v2 = vmov 0   ;;  %s1077_s16 = smov 125   ;;  %s1422_s0 = inlined_call_operand.vmem [shape: f32[8,128], index: 0, kind: input, shape index: {}]   ;;  %s1423_s1 = inlined_call_operand.vmem [shape: s32[8,2], index: 1, kind: input, shape index: {}]   ;;  %s1424_s2 = inlined_call_operand.vmem [shape: f32[1,128], index: 2, kind: input, shape index: {}]   ;;  %s1425_s3 = inlined_call_operand.hbm [shape: f32[8], index: 3, kind: output, shape index: {}]  }
   0x1   :  { %v1141_v0 = vld [vmem:[%s1422_s0] sm:$0xff]  ;;  %1028 = vset.pattern.permute.xlu0 %v1076_v2 }
   0x2   :  { %v16_v1 = vld [vmem:[%s1423_s1] sm:$0xff]  ;;  %51 = vrot.lane.b32.xlu1 %v1141_v0, %s1077_s16 }
   0x3   :  { %21 = vperm.xlu0 %1028, %v16_v1  }
   0x4   :  { %8 = vsyncpa [#allocation3], 0  ;;  %s1078_s17 = smov 122   ;;  %v1079_v3 = vmov 1   ;;  %vm104_vm0 = vcmask 171080   ;;  %vm181_vm1 = vcmask 433512   ;;  %v18_v15 = vlaneseq }
   0x5   :  { %v105_v4 = vsel %vm104_vm0, %v1141_v0, -inf  ;;  %v182_v5 = vsel %vm181_vm1, %v1141_v0, -inf  ;;  %v1155_v6 = vld [vmem:[%s1424_s2] ss:$0 sm:$0xff]  ;;  %s1080_s19 = smov 120   ;;  %vm56_vm2 = vcmask 23552  }
   0x6   :  { %79 = vrot.lane.b32.xlu1 %v1141_v0, %s1078_s17  ;;  %v1160_v17 = vand.u32 127, %v18_v15  ;;  %v1081_v19 = vmov 0.0   ;;  %s1082_s2 = smov 21   ;;  %s1083_s20 = smov 61   ;;  %vm115_vm5 = vcmask 97280   ;;  %vm192_vm6 = vcmask 64512  }
   0x7   :  { %1029 = vset.pattern.permute.xlu0 %v1079_v3  ;;  %s1084_s21 = smov 112   ;;  %s1085_s22 = smov 9   ;;  %vm67_vm7 = vcmask 7168  }
   0x8   :  { %27 = vperm.xlu0 %1029, %v16_v1   ;;  %s1086_s23 = smov 95   ;;  %s1087_s24 = smov 69   ;;  %v32_v22 = vcvt.s32.f32 %v1160_v17 }
   0x9   :  { %s1088_s25 = smov 53   ;;  %s1089_s26 = smov 83  }
   0xa   :  { %v33_v24 = vmul.f32 0.5235988, %v32_v22  ;;  %s1090_s27 = smov 45   ;;  %s1091_s28 = smov 107  }
   0xb   :  { %s1092_s29 = smov 119   ;;  %s1093_s30 = smov 67  }
   0xc   :  { %s1094_s4 = smov 59   ;;  %s1095_s5 = smov 75  }
   0xd   :  { %s1096_s6 = smov 51   ;;  %s1097_s7 = smov 43  }
   0xe   :  { %s1098_s8 = smov 35   ;;  %s1107_s13 = smov 127  }
   0xf   :  { %s1108_s14 = smov 126   ;;  %s1115_s15 = smov 24  }
  0x27   :  { %106 = vmax.xlane.f32.xlu0 %v105_v4 }
  0x2b   :  { %183 = vmax.xlane.f32.xlu0 %v182_v5 }
  0x41   :  { %233 = vrot.lane.b32.xlu0 %v1155_v6, %s1080_s19 }
  0x74   :  { %v52_v7 = vpop.permute.xlu1 %51 }
  0x75   :  { %v54_v8 = vsub.f32 %v1141_v0, %v52_v7 }
  0x77   :  { %v55_v9 = vand.u32 2147483647, %v54_v8 }
  0x78   :  { %v80_v10 = vpop.permute.xlu1 %79 }
  0x79   :  { %v82_v11 = vsub.f32 %v1141_v0, %v80_v10  ;;  %v57_v12 = vsel %vm56_vm2, %v55_v9, 0.0 }
  0x7a   :  { %58 = vadd.xlane.f32.xlu1 %v57_v12 }
  0x7b   :  { %v83_v13 = vand.u32 2147483647, %v82_v11 }
  0x7d   :  { %v84_v14 = vsel %vm56_vm2, %v83_v13, 0.0 }
  0x7e   :  { %85 = vadd.xlane.f32.xlu0 %v84_v14  ;;  %v22_v16 = vpop.permute.xlu0 %21 }
  0x7f   :  { %vm23_vm3 = vcmp.eq.s32.totalorder %v1160_v17, %v22_v16 }
  0x80   :  { %v1163_v20 = vsel %vm23_vm3, 1.0, %v1081_v19 }
  0x81   :  { %v323_v27 = vmul.f32 %v1163_v20, %v33_v24 }
  0x83   :  { %v28_v18 = vpop.permute.xlu0 %27  ;;  %v324_v31 = vsel %vm115_vm5, %v323_v27, 0.0 }
  0x84   :  { %vm29_vm4 = vcmp.eq.s32.totalorder %v1160_v17, %v28_v18 }
  0x85   :  { %v1167_v21 = vsel %vm29_vm4, 1.0, %v1081_v19 }
  0x86   :  { %v229_v7 = vmul.f32 %v1155_v6, %v1167_v21 }
  0x88   :  { %v230_v8 = vsel %vm192_vm6, %v229_v7, 0.0 }
  0x8b   :  { %146 = vrot.lane.b32.xlu1 %v1163_v20, %s1082_s2 }
  0x8f   :  { %258 = vrot.lane.b32.xlu1 %v1167_v21, %s1083_s20 }
  0x93   :  { %240 = vrot.lane.b32.xlu1 %v1155_v6, %s1084_s21 }
  0x94   :  { %123 = vrot.lane.b32.xlu0 %v1163_v20, %s1085_s22 }
  0x97   :  { %327 = vrot.lane.b32.xlu1 %v1141_v0, %s1086_s23 }
  0x98   :  { %269 = vrot.lane.b32.xlu0 %v1167_v21, %s1087_s24 }
  0x9c   :  { %247 = vrot.lane.b32.xlu0 %v1167_v21, %s1088_s25 }
  0xb0   :  { %v1176_v23 = vpop.xlane.xlu0 %106 }
  0xb1   :  { %v108_v41 = vsub.f32 %v1141_v0, %v1176_v23 }
  0xb3   :  { %v109_v42 = vmul.f32 1.442695, %v108_v41 }
  0xb4   :  { %v1178_v25 = vpop.xlane.xlu0 %183 }
  0xb5   :  { %v185_v26 = vsub.f32 %v1141_v0, %v1178_v25 }
  0xb7   :  { %v186_v29 = vmul.f32 1.442695, %v185_v26 }
  0xb8   :  { %v234_v28 = vpop.permute.xlu0 %233 }
  0xb9   :  { %v236_v30 = vmul.f32 %v1167_v21, %v234_v28  ;;  %1043 = vpow2.f32 %v186_v29 }
  0xba   :  { %1045 = vpow2.f32 %v109_v42  ;;  %v1100_v42 = vmov 1326507024  }
  0xbb   :  { %325 = vadd.xlane.f32.xlu0 %v324_v31  ;;  %v237_v32 = vsel %vm192_vm6, %v236_v30, 0.0 }
  0xbc   :  { %238 = vadd.xlane.f32.xlu1 %v237_v32 }
  0xc6   :  { %v1044_v33 = vpop.eup %1043 }
  0xc7   :  { %v1046_v44 = vpop.eup %1045 }
  0xcd   :  { %189 = vrot.lane.b32.xlu1 %v1044_v33, %s1089_s26 }
  0xd1   :  { %200 = vrot.lane.b32.xlu1 %v1167_v21, %s1090_s27 }
 0x103   :  { %v59_v34 = vpop.xlane.xlu1 %58 }
 0x104   :  { %v60_v52 = vand.u32 2147483647, %v59_v34 }
 0x106   :  { %v61_v53 = vmin.f32 %v60_v52, 2.0 }
 0x107   :  { %v147_v35 = vpop.permute.xlu1 %146  ;;  %v86_v43 = vpop.xlane.xlu0 %85 }
 0x108   :  { %v149_v36 = vmul.f32 %v147_v35, %v1141_v0  ;;  %v87_v54 = vand.u32 2147483647, %v86_v43  ;;  %v62_v55 = vsub.f32 %v60_v52, %v61_v53  ;;  %v63_v57 = vmul.f32 0.5, %v61_v53 }
 0x10a   :  { %151 = vrot.lane.b32.xlu1 %v149_v36, %s1091_s28  ;;  %v88_v56 = vmin.f32 %v87_v54, 1.0  ;;  %v65_v58 = vmul.f32 2.0, %v62_v55  ;;  %v64_v59 = vmul.f32 %v63_v57, %v61_v53 }
 0x10b   :  { %v259_v37 = vpop.permute.xlu1 %258  ;;  %v124_v45 = vpop.permute.xlu0 %123 }
 0x10c   :  { %v126_v46 = vmul.f32 %v124_v45, %v1141_v0  ;;  %v261_v48 = vmul.f32 %v259_v37, %v1141_v0  ;;  %v90_v60 = vmul.f32 0.5, %v88_v56  ;;  %v89_v61 = vsub.f32 %v87_v54, %v88_v56 }
 0x10d   :  { %v66_v62 = vadd.f32 %v65_v58, %v64_v59 }
 0x10e   :  { %v91_v63 = vmul.f32 %v90_v60, %v88_v56  ;;  %v1104_v56 = vmov 683565275  }
 0x10f   :  { %v241_v38 = vpop.permute.xlu1 %240  ;;  %v270_v47 = vpop.permute.xlu0 %269  ;;  %v68_v1 = vsel %vm67_vm7, %v66_v62, 0.0 }
 0x110   :  { %v243_v39 = vmul.f32 %v1167_v21, %v241_v38  ;;  %v272_v49 = vmul.f32 %v270_v47, %v1141_v0  ;;  %v92_v4 = vadd.f32 %v91_v63, %v89_v61 }
 0x112   :  { %v244_v40 = vsel %vm192_vm6, %v243_v39, 0.0  ;;  %v93_v5 = vsel %vm67_vm7, %v92_v4, 0.0 }
 0x113   :  { %245 = vadd.xlane.f32.xlu0 %v244_v40  ;;  %v248_v50 = vpop.permute.xlu0 %247  ;;  %v328_v9 = vpop.permute.xlu1 %327  ;;  %v1099_v40 = vmov 920167782  }
 0x114   :  { %v250_v51 = vmul.f32 %v248_v50, %v1141_v0  ;;  %v330_v18 = vmul.f32 %v1163_v20, %v328_v9 }
 0x116   :  { %v331_v27 = vsel %vm115_vm5, %v330_v18, 0.0 }
 0x129   :  { %112 = vrot.lane.b32.xlu0 %v1046_v44, %s1092_s29 }
 0x12d   :  { %128 = vrot.lane.b32.xlu0 %v126_v46, %s1092_s29  ;;  %v1101_v46 = vmov 2102212464  }
 0x131   :  { %263 = vrot.lane.b32.xlu0 %v261_v48, %s1093_s30 }
 0x135   :  { %274 = vrot.lane.b32.xlu0 %v272_v49, %s1094_s4  ;;  %v1102_v49 = vmov 2475754826  }
 0x139   :  { %252 = vrot.lane.b32.xlu0 %v250_v51, %s1095_s5  ;;  %v1103_v51 = vmov 2131351028  }
 0x144   :  { %v1205_v11 = vpop.xlane.xlu0 %325 }
 0x145   :  { %v1203_v10 = vpop.xlane.xlu1 %238  ;;  %v1219_v20 = vadd.f32 %v1205_v11, %v1141_v0 }
 0x147   :  { %v622_v32 = vand.u32 2139095040, %v1219_v20  ;;  %v619_v44 = vand.u32 2147483647, %v1219_v20  ;;  %vm621_vm15 = vcmp.lt.s32.totalorder %v1219_v20, 0 }
 0x149   :  { %v190_v12 = vpop.permute.xlu1 %189  ;;  %v623_v33 = vshrl.u32 %v622_v32, 23  ;;  %v626_v60 = vand.u32 8388607, %v619_v44  ;;  %vm1312_vm0 = vcmp.le.f32.partialorder %v619_v44, 0.7853982 }
 0x14a   :  { %v193_v19 = vsel %vm192_vm6, %v190_v12, 0.0 }
 0x14b   :  { %v956_v35 = vadd.s32 4294967169, %v623_v33  ;;  %v627_v9 = vor.u32 8388608, %v626_v60 }
 0x14d   :  { %v201_v16 = vpop.permute.xlu1 %200  ;;  %v629_v36 = vadd.s32 1, %v956_v35 }
 0x14e   :  { %v203_v34 = vmul.f32 %v201_v16, %v1141_v0 }
 0x14f   :  { %vm630_vm8 = vcmp.gt.s32.totalorder %v629_v36, 0 }
 0x150   :  { %v631_v37 = vsel %vm630_vm8, %v629_v36, 0 }
 0x151   :  { %v633_v38 = vand.u32 31, %v631_v37  ;;  %v1229_v45 = vshrl.u32 %v631_v37, 5 }
 0x153   :  { %v634_v39 = vsub.s32 32, %v633_v38  ;;  %v645_v47 = vshll.u32 %v1101_v46, %v633_v38  ;;  %v648_v48 = vshll.u32 %v1099_v40, %v633_v38  ;;  %v636_v57 = vshll.u32 %v1104_v56, %v633_v38 }
 0x154   :  { %v639_v58 = vshll.u32 %v1102_v49, %v633_v38  ;;  %v642_v59 = vshll.u32 %v1103_v51, %v633_v38  ;;  %vm654_vm9 = vcmp.lt.s32.totalorder %v1229_v45, 4  ;;  %vm651_vm10 = vcmp.lt.s32.totalorder %v1229_v45, 1 }
 0x155   :  { %v646_v41 = vshrl.u32 %v1099_v40, %v634_v39  ;;  %v649_v43 = vshrl.u32 %v1100_v42, %v634_v39  ;;  %v637_v50 = vshrl.u32 %v1102_v49, %v634_v39  ;;  %v640_v52 = vshrl.u32 %v1103_v51, %v634_v39 }
 0x156   :  { %v643_v53 = vshrl.u32 %v1101_v46, %v634_v39  ;;  %vm653_vm11 = vcmp.lt.s32.totalorder %v1229_v45, 3  ;;  %vm652_vm12 = vcmp.lt.s32.totalorder %v1229_v45, 2 }
 0x157   :  { %v647_v54 = vor.u32 %v646_v41, %v645_v47  ;;  %v650_v55 = vor.u32 %v649_v43, %v648_v48  ;;  %v638_v61 = vor.u32 %v637_v50, %v636_v57  ;;  %v641_v62 = vor.u32 %v640_v52, %v639_v58 }
 0x158   :  { %69 = vadd.xlane.f32.xlu0 %v68_v1  ;;  %v644_v63 = vor.u32 %v643_v53, %v642_v59  ;;  %v635_v41 = vshrl.u32 %v1104_v56, %v634_v39 }
 0x159   :  { %v660_v1 = vsel %vm654_vm9, %v647_v54, 920167782  ;;  %v664_v4 = vsel %vm654_vm9, %v650_v55, 1326507024  ;;  %v659_v12 = vsel %vm651_vm10, %v638_v61, %v641_v62 }
 0x15a   :  { %v665_v16 = vsel %vm653_vm11, %v647_v54, %v664_v4  ;;  %v656_v37 = vsel %vm654_vm9, %v644_v63, 2102212464  ;;  %v655_v48 = vsel %vm651_vm10, %v635_v41, %v638_v61 }
 0x15b   :  { %v657_v50 = vsel %vm653_vm11, %v641_v62, %v656_v37 }
 0x15c   :  { %94 = vadd.xlane.f32.xlu0 %v93_v5  ;;  %v1105_v5 = vmov 101   ;;  %v658_v39 = vsel %vm652_vm12, %v655_v48, %v657_v50 }
 0x15d   :  { %1030 = vset.pattern.permute.xlu0 %v1105_v5 }
 0x160   :  { %231 = vadd.xlane.f32.xlu0 %v230_v8  ;;  %v1106_v8 = vmov 102  }
 0x161   :  { %1031 = vset.pattern.permute.xlu1 %v1106_v8 }
 0x176   :  { %336 = vrot.lane.b32.xlu0 %v1141_v0, %s1096_s6 }
 0x17c   :  { %v152_v24 = vpop.permute.xlu1 %151 }
 0x17d   :  { %v154_v28 = vsel %vm115_vm5, %v152_v24, 0.0  ;;  %v667_v24 = vshll.u32 %v627_v9, 8 }
 0x19c   :  { %v1207_v13 = vpop.xlane.xlu0 %245 }
 0x1a0   :  { %v113_v14 = vpop.permute.xlu0 %112 }
 0x1a1   :  { %v116_v15 = vsel %vm115_vm5, %v113_v14, 0.0  ;;  %v661_v14 = vsel %vm653_vm11, %v644_v63, %v660_v1 }
 0x1a2   :  { %117 = vadd.xlane.f32.xlu1 %v116_v15  ;;  %v663_v15 = vsel %vm651_vm10, %v641_v62, %v644_v63  ;;  %v662_v18 = vsel %vm652_vm12, %v659_v12, %v661_v14  ;;  %v674_v62 = vmul.u32 %v667_v24, %v658_v39 }
 0x1a4   :  { %v129_v6 = vpop.permute.xlu0 %128 }
 0x1a5   :  { %v131_v22 = vsel %vm115_vm5, %v129_v6, 0.0 }
 0x1a6   :  { %194 = vadd.xlane.f32.xlu1 %v193_v19  ;;  %132 = vadd.xlane.f32.xlu0 %v131_v22  ;;  %v666_v19 = vsel %vm652_vm12, %v663_v15, %v665_v16 }
 0x1a8   :  { %v264_v26 = vpop.permute.xlu0 %263 }
 0x1a9   :  { %v266_v30 = vsel %vm192_vm6, %v264_v26, 0.0 }
 0x1aa   :  { %332 = vadd.xlane.f32.xlu1 %v331_v27  ;;  %155 = vadd.xlane.f32.xlu0 %v154_v28  ;;  %v1261_v27 = vmul.u32.u64.low %v667_v24, %v666_v19  ;;  %v1262_v28 = vmul.u32.u64.high %v667_v24, %v666_v19, %v1261_v27 }
 0x1ac   :  { %v275_v29 = vpop.permute.xlu0 %274 }
 0x1ad   :  { %v277_v31 = vsel %vm192_vm6, %v275_v29, 0.0 }
 0x1ae   :  { %267 = vadd.xlane.f32.xlu0 %v266_v30  ;;  %278 = vadd.xlane.f32.xlu1 %v277_v31  ;;  %v1264_v29 = vmul.u32.u64.low %v667_v24, %v662_v18  ;;  %v1265_v30 = vmul.u32.u64.high %v667_v24, %v662_v18, %v1264_v29 }
 0x1b0   :  { %v253_v7 = vpop.permute.xlu0 %252  ;;  %v677_v54 = vadd.s32 1, %v1265_v30  ;;  %vm676_vm13 = vc.u32 %v1262_v28, %v1264_v29  ;;  %v675_v18 = vadd.s32 %v1264_v29, %v1262_v28 }
 0x1b2   :  { %v678_v61 = vsel %vm676_vm13, %v677_v54, %v1265_v30 }
 0x1b3   :  { %v679_v63 = vadd.s32 %v678_v61, %v674_v62 }
 0x1b5   :  { %v680_v1 = vadd.s32 536870912, %v679_v63 }
 0x1b7   :  { %v681_v4 = vshrl.u32 %v680_v1, 30 }
 0x1b9   :  { %v682_v5 = vshll.u32 %v681_v4, 30 }
 0x1bf   :  { %205 = vrot.lane.b32.xlu1 %v203_v34, %s1089_s26  ;;  %v255_v34 = vsel %vm192_vm6, %v253_v7, 0.0  ;;  %v683_v7 = vsub.s32 %v679_v63, %v682_v5 }
 0x1c1   :  { %v685_v8 = vsub.s32 0, %v683_v7 }
 0x1c3   :  { %v957_v9 = vmin.u32 %v685_v8, %v683_v7 }
 0x1c4   :  { %344 = vrot.lane.b32.xlu0 %v1141_v0, %s1097_s7 }
 0x1c5   :  { %v687_v12 = vclz %v957_v9 }
 0x1c7   :  { %v958_v14 = vadd.s32 4294967294, %v687_v12 }
 0x1c8   :  { %352 = vrot.lane.b32.xlu0 %v1141_v0, %s1098_s8  ;;  %s1117_s8 = smov [#allocation2]  }
 0x1c9   :  { %vm959_vm14 = vcmp.lt.s32.totalorder %v958_v14, 0 }
 0x1ca   :  { %v690_v45 = vsel %vm959_vm14, 0, %v958_v14 }
 0x1cb   :  { %v695_v15 = vsub.s32 4294967266, %v690_v45  ;;  %v692_v24 = vshll.u32 %v683_v7, %v690_v45 }
 0x1cd   :  { %v696_v16 = vadd.s32 127, %v695_v15 }
 0x1cf   :  { %v697_v19 = vshll.u32 %v696_v16, 23 }
 0x1e1   :  { %v70_v6 = vpop.xlane.xlu0 %69 }
 0x1e2   :  { %v71_v22 = vrot.slane %v70_v6, 4 }
 0x1e4   :  { %v72_v26 = vadd.f32 %v71_v22, %v70_v6  ;;  %v691_v6 = vsub.s32 32, %v690_v45 }
 0x1e5   :  { %v95_v31 = vpop.xlane.xlu0 %94 }
 0x1e6   :  { %v73_v32 = vrot.slane %v72_v26, 2  ;;  %v96_v33 = vrot.slane %v95_v31, 4  ;;  %v693_v22 = vshrl.u32 %v675_v18, %v691_v6 }
 0x1e7   :  { %256 = vadd.xlane.f32.xlu0 %v255_v34 }
 0x1e8   :  { %v97_v35 = vadd.f32 %v96_v33, %v95_v31  ;;  %v74_v36 = vadd.f32 %v73_v32, %v72_v26  ;;  %v698_v26 = vor.u32 4788187, %v697_v19  ;;  %v694_v30 = vor.u32 %v693_v22, %v692_v24 }
 0x1e9   :  { %v1270_v38 = vpop.xlane.xlu0 %231 }
 0x1ea   :  { %v98_v43 = vrot.slane %v97_v35, 2  ;;  %v75_v47 = vrot.slane %v74_v36, 1  ;;  %v699_v31 = vand.u32 2147483647, %v698_v26  ;;  %v701_v34 = vcvt.s32.f32 %v694_v30 }
 0x1ec   :  { %v76_v52 = vadd.f32 %v75_v47, %v74_v36  ;;  %v99_v53 = vadd.f32 %v98_v43, %v97_v35  ;;  %v702_v35 = vmul.f32 %v701_v34, %v699_v31 }
 0x1ed   :  { %v337_v55 = vpop.permute.xlu0 %336 }
 0x1ee   :  { %v339_v57 = vmul.f32 %v1167_v21, %v337_v55  ;;  %964 = vpush %v76_v52  ;;  %v100_v58 = vrot.slane %v99_v53, 1  ;;  %v703_v29 = vxor.u32 2147483648, %v702_v35 }
 0x1f0   :  { %v340_v59 = vsel %vm192_vm6, %v339_v57, 0.0  ;;  %v101_v60 = vadd.f32 %v100_v58, %v99_v53  ;;  %v704_v50 = vsel %vm621_vm15, %v703_v29, %v702_v35  ;;  %v705_v57 = vsub.s32 4, %v681_v4 }
 0x1f1   :  { %341 = vadd.xlane.f32.xlu1 %v340_v59 }
 0x1f2   :  { %966 = vpush %v101_v60  ;;  %v707_v60 = vsel %vm1312_vm0, %v1219_v20, %v704_v50  ;;  %v706_v5 = vsel %vm621_vm15, %v705_v57, %v681_v4  ;;  %vm711_vm15 = vweird.f32 %v1219_v20  ;;  %v362_v20 = vadd.f32 %v1207_v13, %v1141_v0 }
 0x1f3   :  { %v708_v45 = vsel %vm1312_vm0, 0, %v706_v5 }
 0x21f   :  { %s1284_s9 = spop %964 }
 0x220   :  { %s78_s10 = smul.f32 0.125, %s1284_s9 }
 0x222   :  { %917 = sst [smem:[#allocation2]] %s78_s10 }
 0x223   :  { %s1289_s11 = spop %966 }
 0x224   :  { %s103_s12 = smul.f32 0.125, %s1289_s11 }
 0x226   :  { %919 = sst [smem:[#allocation2 + $0x1]] %s103_s12 }
 0x22b   :  { %v118_v27 = vpop.xlane.xlu1 %117 }
 0x22c   :  { %1047 = vlog2.f32 %v118_v27 }
 0x22d   :  { %1049 = vrcp.f32 %v1203_v10 }
 0x22e   :  { %1051 = vrcp.f32 %v1207_v13 }
 0x22f   :  { %v1295_v32 = vpop.xlane.xlu1 %194  ;;  %v133_v33 = vpop.xlane.xlu0 %132  ;;  %1053 = vcosq.f32 %v707_v60 }
 0x230   :  { %1055 = vsinq.f32 %v707_v60 }
 0x233   :  { %v333_v36 = vpop.xlane.xlu1 %332  ;;  %v1298_v37 = vpop.xlane.xlu0 %155 }
 0x234   :  { %v1301_v28 = vadd.f32 %v333_v36, %v1205_v11 }
 0x236   :  { %v372_v41 = vand.u32 2139095040, %v1301_v28  ;;  %v369_v54 = vand.u32 2147483647, %v1301_v28 }
 0x237   :  { %v1304_v43 = vpop.xlane.xlu0 %267 }
 0x238   :  { %v373_v47 = vshrl.u32 %v372_v41, 23  ;;  %v376_v44 = vand.u32 8388607, %v369_v54 }
 0x239   :  { %v1048_v48 = vpop.eup %1047 }
 0x23a   :  { %v120_v52 = vmul.f32 0.6931472, %v1048_v48  ;;  %v948_v53 = vadd.s32 4294967169, %v373_v47  ;;  %v1050_v61 = vpop.eup %1049  ;;  %v377_v15 = vor.u32 8388608, %v376_v44  ;;  %v815_v44 = vadd.s32 3, %v708_v45 }
 0x23b   :  { %v345_v55 = vpop.permute.xlu0 %344  ;;  %v285_v9 = vmul.f32 %v1050_v61, %v1141_v0 }
 0x23c   :  { %v121_v58 = vadd.f32 %v120_v52, %v1176_v23  ;;  %v379_v39 = vadd.s32 1, %v948_v53  ;;  %v347_v59 = vmul.f32 %v1167_v21, %v345_v55  ;;  %v417_v52 = vshll.u32 %v377_v15, 8  ;;  %v1052_v53 = vpop.eup %1051 }
 0x23d   :  { %v286_v41 = vsub.f32 %v285_v9, %v1304_v43  ;;  %v1054_v61 = vpop.eup %1053 }
 0x23e   :  { %v134_v62 = vsub.f32 %v121_v58, %v133_v33  ;;  %vm380_vm1 = vcmp.gt.s32.totalorder %v379_v39, 0  ;;  %v348_v63 = vsel %vm192_vm6, %v347_v59, 0.0 }
 0x23f   :  { %v381_v1 = vsel %vm380_vm1, %v379_v39, 0  ;;  %349 = vadd.xlane.f32.xlu0 %v348_v63  ;;  %v353_v23 = vpop.permute.xlu0 %352  ;;  %v294_v63 = vmul.f32 %v1052_v53, %v1141_v0  ;;  %vm371_vm1 = vcmp.lt.s32.totalorder %v1301_v28, 0 }
 0x240   :  { %v383_v7 = vand.u32 31, %v381_v1  ;;  %v135_v8 = vsel %vm67_vm7, %v134_v62, 0.0  ;;  %v355_v14 = vmul.f32 %v1167_v21, %v353_v23  ;;  %v382_v16 = vshrl.u32 %v381_v1, 5  ;;  %v1056_v1 = vpop.eup %1055 }
 0x241   :  { %136 = vadd.xlane.f32.xlu1 %v135_v8 }
 0x242   :  { %v384_v12 = vsub.s32 32, %v383_v7  ;;  %v386_v6 = vshll.u32 %v1104_v56, %v383_v7  ;;  %v389_v4 = vshll.u32 %v1102_v49, %v383_v7  ;;  %v392_v22 = vshll.u32 %v1103_v51, %v383_v7 }
 0x243   :  { %v395_v26 = vshll.u32 %v1101_v46, %v383_v7  ;;  %v398_v27 = vshll.u32 %v1099_v40, %v383_v7  ;;  %v356_v35 = vsel %vm192_vm6, %v355_v14, 0.0  ;;  %vm401_vm2 = vcmp.lt.s32.totalorder %v382_v16, 1 }
 0x244   :  { %v387_v18 = vshrl.u32 %v1102_v49, %v384_v12  ;;  %v390_v19 = vshrl.u32 %v1103_v51, %v384_v12  ;;  %v393_v24 = vshrl.u32 %v1101_v46, %v384_v12  ;;  %v396_v21 = vshrl.u32 %v1099_v40, %v384_v12  ;;  %357 = vadd.xlane.f32.xlu0 %v356_v35 }
 0x245   :  { %v399_v30 = vshrl.u32 %v1100_v42, %v384_v12  ;;  %vm404_vm3 = vcmp.lt.s32.totalorder %v382_v16, 4  ;;  %v385_v40 = vshrl.u32 %v1104_v56, %v384_v12  ;;  %vm403_vm4 = vcmp.lt.s32.totalorder %v382_v16, 3  ;;  %v279_v56 = vpop.xlane.xlu1 %278 }
 0x246   :  { %v388_v31 = vor.u32 %v387_v18, %v386_v6  ;;  %v391_v33 = vor.u32 %v390_v19, %v389_v4  ;;  %v394_v34 = vor.u32 %v393_v24, %v392_v22  ;;  %v397_v49 = vor.u32 %v396_v21, %v395_v26 }
 0x247   :  { %v400_v36 = vor.u32 %v399_v30, %v398_v27  ;;  %vm402_vm5 = vcmp.lt.s32.totalorder %v382_v16, 2  ;;  %v295_v5 = vsub.f32 %v294_v63, %v279_v56  ;;  %v287_v7 = vand.u32 2147483647, %v286_v41 }
 0x248   :  { %v406_v51 = vsel %vm404_vm3, %v394_v34, 2102212464  ;;  %v409_v29 = vsel %vm401_vm2, %v388_v31, %v391_v33  ;;  %v413_v46 = vsel %vm401_vm2, %v391_v33, %v394_v34  ;;  %v410_v42 = vsel %vm404_vm3, %v397_v49, 920167782 }
 0x249   :  { %v414_v47 = vsel %vm404_vm3, %v400_v36, 1326507024  ;;  %v411_v48 = vsel %vm403_vm4, %v394_v34, %v410_v42  ;;  %v405_v55 = vsel %vm401_vm2, %v385_v40, %v388_v31  ;;  %v407_v57 = vsel %vm403_vm4, %v391_v33, %v406_v51 }
 0x24a   :  { %v415_v50 = vsel %vm403_vm4, %v397_v49, %v414_v47  ;;  %v412_v11 = vsel %vm402_vm5, %v409_v29, %v411_v48  ;;  %v408_v62 = vsel %vm402_vm5, %v405_v55, %v407_v57  ;;  %v816_v12 = vand.u32 3, %v815_v44 }
 0x24b   :  { %v416_v58 = vsel %vm402_vm5, %v413_v46, %v415_v50  ;;  %v1351_v60 = vmul.u32.u64.low %v417_v52, %v412_v11  ;;  %v1352_v43 = vmul.u32.u64.high %v417_v52, %v412_v11, %v1351_v60  ;;  %v424_v8 = vmul.u32 %v417_v52, %v408_v62 }
 0x24c   :  { %v1348_v39 = vmul.u32.u64.low %v417_v52, %v416_v58  ;;  %v1349_v59 = vmul.u32.u64.high %v417_v52, %v416_v58, %v1348_v39  ;;  %v712_v14 = vand.u32 3, %v708_v45  ;;  %v715_v16 = vxor.u32 2147483648, %v1056_v1 }
 0x24d   :  { %v427_v23 = vadd.s32 1, %v1352_v43  ;;  %v718_v6 = vxor.u32 2147483648, %v1054_v61  ;;  %v361_v4 = vadd.f32 %v1203_v10, %v1141_v0  ;;  %v296_v18 = vand.u32 2147483647, %v295_v5 }
 0x24e   :  { %vm426_vm8 = vc.u32 %v1349_v59, %v1351_v60  ;;  %vm818_vm9 = vcmp.eq.s32.totalorder %v816_v12, 0  ;;  %vm821_vm10 = vcmp.eq.s32.totalorder %v816_v12, 2  ;;  %vm714_vm11 = vcmp.eq.s32.totalorder %v712_v14, 0 }
 0x24f   :  { %v428_v9 = vsel %vm426_vm8, %v427_v23, %v1352_v43  ;;  %vm717_vm12 = vcmp.eq.s32.totalorder %v712_v14, 2  ;;  %v360_v22 = vadd.f32 %v1270_v38, %v1141_v0  ;;  %v820_v45 = vsel %vm818_vm9, %v1054_v61, %v715_v16 }
 0x250   :  { %v429_v15 = vadd.s32 %v428_v9, %v424_v8  ;;  %v823_v26 = vsel %vm821_vm10, %v718_v6, %v1056_v1  ;;  %v612_v21 = vmul.f32 0.5, %v361_v4  ;;  %v716_v27 = vsel %vm714_vm11, %v1054_v61, %v715_v16 }
 0x251   :  { %v719_v30 = vsel %vm717_vm12, %v718_v6, %v1056_v1  ;;  %vm817_vm13 = vcmp.lt.s32.totalorder %v816_v12, 2  ;;  %vm713_vm14 = vcmp.lt.s32.totalorder %v712_v14, 2  ;;  %v598_v35 = vmul.f32 0.5, %v360_v22 }
 0x252   :  { %289 = vrot.lane.b32.xlu1 %v287_v7, %s1107_s13  ;;  %v430_v19 = vadd.s32 536870912, %v429_v15  ;;  %v824_v33 = vsel %vm817_vm13, %v820_v45, %v823_v26  ;;  %v720_v49 = vsel %vm713_vm14, %v716_v27, %v719_v30  ;;  %v1109_v29 = vmov 104  }
 0x253   :  { %v825_v51 = vsel %vm711_vm15, nan, %v824_v33  ;;  %v721_v46 = vsel %vm711_vm15, nan, %v720_v49  ;;  %v425_v50 = vadd.s32 %v1351_v60, %v1349_v59  ;;  %v1110_v55 = vmov 3  }
 0x254   :  { %v1364_v24 = vshrl.u32 %v430_v19, 30  ;;  %v849_v40 = vsub.f32 0.0, %v825_v51  ;;  %v158_v56 = vmul.f32 3.8197186, %v1141_v0  ;;  %v605_v61 = vmul.f32 0.5, %v362_v20 }
 0x255   :  { %v1111_v62 = vmov 103   ;;  %v872_v60 = vmul.f32 2.0, %v1141_v0  ;;  %v1112_v23 = vmov 2   ;;  %v1113_v7 = vmov 4  }
 0x256   :  { %298 = vrot.lane.b32.xlu1 %v296_v18, %s1108_s14  ;;  %v432_v31 = vshll.u32 %v1364_v24, 30  ;;  %v159_v1 = vsub.f32 %v1298_v37, %v158_v56  ;;  %v455_v9 = vsub.s32 4, %v1364_v24  ;;  %vm370_vm2 = vcmp.le.f32.partialorder %v369_v54, 0.7853982 }
 0x257   :  { %v1114_v14 = vmov 5   ;;  %vm461_vm11 = vweird.f32 %v1301_v28 }
 0x258   :  { %v433_v34 = vsub.s32 %v429_v15, %v432_v31  ;;  %v160_v8 = vand.u32 2147483647, %v159_v1  ;;  %v456_v16 = vsel %vm371_vm1, %v455_v9, %v1364_v24 }
 0x259   :  { %v458_v4 = vsel %vm370_vm2, 0, %v456_v16 }
 0x25a   :  { %615 = vperm.xlu1 %1031, %v612_v21   ;;  %v435_v36 = vsub.s32 0, %v433_v34  ;;  %601 = vperm.xlu0 %1030, %v598_v35   ;;  %v161_v15 = vmin.f32 %v160_v8, 1.0  ;;  %v565_v18 = vadd.s32 3, %v458_v4  ;;  %v462_v22 = vand.u32 3, %v458_v4 }
 0x25c   :  { %v949_v41 = vmin.u32 %v435_v36, %v433_v34  ;;  %v163_v6 = vmul.f32 0.5, %v161_v15  ;;  %v162_v54 = vsub.f32 %v160_v8, %v161_v15  ;;  %v566_v45 = vand.u32 3, %v565_v18 }
 0x25d   :  { %vm467_vm3 = vcmp.eq.s32.totalorder %v462_v22, 2  ;;  %vm464_vm5 = vcmp.eq.s32.totalorder %v462_v22, 0  ;;  %vm463_vm9 = vcmp.lt.s32.totalorder %v462_v22, 2 }
 0x25e   :  { %1032 = vset.pattern.permute.xlu1 %v1109_v29  ;;  %v437_v42 = vclz %v949_v41  ;;  %1033 = vset.pattern.permute.xlu0 %v1109_v29  ;;  %v164_v19 = vmul.f32 %v163_v6, %v161_v15  ;;  %vm571_vm4 = vcmp.eq.s32.totalorder %v566_v45, 2  ;;  %vm568_vm8 = vcmp.eq.s32.totalorder %v566_v45, 0 }
 0x25f   :  { %828 = vperm.xlu1 %1032, %v721_v46   ;;  %852 = vperm.xlu0 %1033, %v849_v40   ;;  %vm567_vm10 = vcmp.lt.s32.totalorder %v566_v45, 2  ;;  %v44_v46 = vadd.s32 1, %v1160_v17  ;;  %v34_v41 = vshra.s32 %v1160_v17, 1 }
 0x260   :  { %v950_v47 = vadd.s32 4294967294, %v437_v42  ;;  %v165_v26 = vadd.f32 %v164_v19, %v162_v54 }
 0x261   :  { %v45_v40 = vshra.s32 %v44_v46, 1  ;;  %v35_v42 = vand.u32 1, %v34_v41 }
 0x262   :  { %vm951_vm0 = vcmp.lt.s32.totalorder %v950_v47, 0 }
 0x263   :  { %834 = vperm.xlu1 %1032, %v825_v51   ;;  %v440_v48 = vsel %vm951_vm0, 0, %v950_v47  ;;  %1036 = vset.pattern.permute.xlu0 %v1076_v2  ;;  %v206_v51 = vpop.permute.xlu1 %205  ;;  %v46_v47 = vand.u32 1, %v45_v40 }
 0x264   :  { %v441_v52 = vsub.s32 32, %v440_v48  ;;  %v445_v53 = vsub.s32 4294967266, %v440_v48  ;;  %840 = vperm.xlu0 %1036, %v1141_v0   ;;  %v442_v57 = vshll.u32 %v433_v34, %v440_v48  ;;  %v208_v29 = vsel %vm192_vm6, %v206_v51, 0.0 }
 0x265   :  { %v36_v48 = vmul.u32 2, %v35_v42 }
 0x266   :  { %v443_v11 = vshrl.u32 %v425_v50, %v441_v52  ;;  %v446_v58 = vadd.s32 127, %v445_v53 }
 0x267   :  { %1034 = vset.pattern.permute.xlu1 %v1110_v55  ;;  %v37_v53 = vsub.s32 1, %v36_v48 }
 0x268   :  { %580 = vperm.xlu1 %1034, %v1141_v0   ;;  %v444_v39 = vor.u32 %v443_v11, %v442_v57  ;;  %v447_v43 = vshll.u32 %v446_v58, 23  ;;  %1039 = vset.pattern.permute.xlu0 %v1079_v3  ;;  %v1065_v11 = vld [vmem:[%s1422_s0] sm:$0xff]  ;;  %s1116_s0 = smov 27  }
 0x269   :  { %845 = vperm.xlu0 %1039, %v1141_v0   ;;  %v38_v56 = vcvt.s32.f32 %v37_v53 }
 0x26a   :  { %v448_v59 = vor.u32 4788187, %v447_v43  ;;  %v451_v44 = vcvt.s32.f32 %v444_v39 }
 0x26c   :  { %1035 = vset.pattern.permute.xlu1 %v1111_v62  ;;  %v449_v63 = vand.u32 2147483647, %v448_v59 }
 0x26d   :  { %608 = vperm.xlu1 %1035, %v605_v61   ;;  %1042 = vset.pattern.permute.xlu0 %v1112_v23 }
 0x26e   :  { %v452_v5 = vmul.f32 %v451_v44, %v449_v63  ;;  %883 = vperm.xlu0 %1042, %v872_v60  }
 0x270   :  { %v453_v3 = vxor.u32 2147483648, %v452_v5  ;;  %v257_v50 = vpop.xlane.xlu0 %256 }
 0x271   :  { %1037 = vset.pattern.permute.xlu1 %v1113_v7 }
 0x272   :  { %585 = vperm.xlu1 %1037, %v1141_v0   ;;  %v454_v12 = vsel %vm371_vm1, %v453_v3, %v452_v5 }
 0x273   :  { %v457_v37 = vsel %vm370_vm2, %v1301_v28, %v454_v12  ;;  %v47_v28 = vmul.u32 2, %v46_v47 }
 0x274   :  { %1057 = vcosq.f32 %v457_v37 }
 0x275   :  { %1059 = vsinq.f32 %v457_v37  ;;  %v48_v57 = vsub.s32 1, %v47_v28 }
 0x276   :  { %1038 = vset.pattern.permute.xlu1 %v1114_v14  ;;  %1061 = vrcp.f32 %v1270_v38 }
 0x277   :  { %594 = vperm.xlu1 %1038, %v1141_v0   ;;  %v49_v62 = vcvt.s32.f32 %v48_v57  ;;  %1063 = vlog2.f32 %v1295_v32 }
 0x27a   :  { %v342_v20 = vpop.xlane.xlu1 %341 }
 0x27b   :  { %1040 = vset.pattern.permute.xlu1 %v1112_v23  ;;  %v343_v52 = vadd.f32 %v342_v20, %v1270_v38 }
 0x27c   :  { %859 = vperm.xlu1 %1040, %v1141_v0  }
 0x27d   :  { %v363_v39 = vmul.f32 0.5, %v343_v52 }
 0x27f   :  { %v364_v38 = vmul.f32 %v363_v39, %v38_v56 }
 0x280   :  { %1041 = vset.pattern.permute.xlu1 %v1076_v2 }
 0x281   :  { %875 = vperm.xlu1 %1041, %v872_v60   ;;  %v1058_v21 = vpop.eup %1057 }
 0x282   :  { %v1060_v27 = vpop.eup %1059  ;;  %v468_v30 = vxor.u32 2147483648, %v1058_v21 }
 0x283   :  { %v465_v24 = vxor.u32 2147483648, %v1060_v27  ;;  %v1062_v55 = vpop.eup %1061 }
 0x284   :  { %v469_v31 = vsel %vm467_vm3, %v468_v30, %v1060_v27  ;;  %v573_v0 = vsel %vm571_vm4, %v468_v30, %v1060_v27  ;;  %v281_v58 = vmul.f32 %v1065_v11, %v1062_v55  ;;  %v39_v30 = vshra.s32 %v1160_v17, 2 }
 0x285   :  { %167 = vrot.lane.b32.xlu1 %v165_v26, %s1115_s15  ;;  %v466_v33 = vsel %vm464_vm5, %v1058_v21, %v465_v24  ;;  %v570_v2 = vsel %vm568_vm8, %v1058_v21, %v465_v24 }
 0x286   :  { %v470_v34 = vsel %vm463_vm9, %v466_v33, %v469_v31  ;;  %v574_v35 = vsel %vm567_vm10, %v570_v2, %v573_v0  ;;  %v282_v59 = vsub.f32 %v281_v58, %v257_v50 }
 0x287   :  { %v471_v49 = vsel %vm461_vm11, nan, %v470_v34  ;;  %v575_v36 = vsel %vm461_vm11, nan, %v574_v35  ;;  %v40_v34 = vand.u32 1, %v39_v30 }
 0x288   :  { %v589_v1 = vsub.f32 0.0, %v575_v36  ;;  %v283_v7 = vand.u32 2147483647, %v282_v59  ;;  %v576_v8 = vmul.f32 %v471_v49, %v364_v38 }
 0x28a   :  { %v590_v37 = vmul.f32 %v589_v1, %v364_v38 }
 0x2a9   :  { %209 = vadd.xlane.f32.xlu1 %v208_v29 }
 0x2c8   :  { %v350_v43 = vpop.xlane.xlu0 %349 }
 0x2c9   :  { %v351_v61 = vadd.f32 %v350_v43, %v1203_v10 }
 0x2ca   :  { %v137_v60 = vpop.xlane.xlu1 %136 }
 0x2cb   :  { %v367_v63 = vmul.f32 0.5, %v351_v61  ;;  %v138_v44 = vrot.slane %v137_v60, 4 }
 0x2cd   :  { %v139_v23 = vadd.f32 %v138_v44, %v137_v60  ;;  %v368_v5 = vmul.f32 %v367_v63, %v49_v62  ;;  %v358_v0 = vpop.xlane.xlu0 %357 }
 0x2ce   :  { %v290_v3 = vpop.permute.xlu1 %289  ;;  %v359_v51 = vadd.f32 %v358_v0, %v1207_v13 }
 0x2cf   :  { %v140_v9 = vrot.slane %v139_v23, 2  ;;  %v577_v12 = vmul.f32 %v575_v36, %v368_v5  ;;  %v591_v14 = vmul.f32 %v471_v49, %v368_v5  ;;  %v292_v15 = vadd.f32 %v290_v3, %v283_v7 }
 0x2d0   :  { %v41_v49 = vmul.u32 2, %v40_v34  ;;  %v365_v42 = vmul.f32 0.5, %v359_v51 }
 0x2d1   :  { %v141_v16 = vadd.f32 %v140_v9, %v139_v23  ;;  %v578_v6 = vadd.f32 %v577_v12, %v576_v8  ;;  %v592_v10 = vadd.f32 %v591_v14, %v590_v37 }
 0x2d2   :  { %v299_v4 = vpop.permute.xlu1 %298  ;;  %v42_v29 = vsub.s32 1, %v41_v49 }
 0x2d3   :  { %v301_v18 = vadd.f32 %v299_v4, %v292_v15  ;;  %v142_v19 = vrot.slane %v141_v16, 1 }
 0x2d4   :  { %v43_v48 = vcvt.s32.f32 %v42_v29 }
 0x2d5   :  { %v302_v54 = vand.u32 2147483647, %v301_v18  ;;  %v143_v22 = vadd.f32 %v142_v19, %v141_v16  ;;  %v602_v35 = vpop.permute.xlu0 %601 }
 0x2d6   :  { %v616_v45 = vpop.permute.xlu1 %615  ;;  %v604_v47 = vmul.f32 %v602_v35, %v38_v56  ;;  %v366_v55 = vmul.f32 %v365_v42, %v43_v48 }
 0x2d7   :  { %v303_v26 = vmin.f32 %v302_v54, 1.0  ;;  %968 = vpush %v143_v22  ;;  %v618_v41 = vmul.f32 %v616_v45, %v49_v62 }
 0x2d9   :  { %v305_v21 = vmul.f32 0.5, %v303_v26  ;;  %v304_v24 = vsub.f32 %v302_v54, %v303_v26 }
 0x2da   :  { %v829_v27 = vpop.permute.xlu1 %828  ;;  %v853_v46 = vpop.permute.xlu0 %852 }
 0x2db   :  { %v306_v31 = vmul.f32 %v305_v21, %v303_v26  ;;  %v831_v28 = vmul.f32 %v829_v27, %v604_v47  ;;  %v856_v58 = vmul.f32 %v829_v27, %v618_v41  ;;  %v855_v39 = vmul.f32 %v853_v46, %v604_v47  ;;  %v1064_v21 = vpop.eup %1063 }
 0x2dc   :  { %v197_v27 = vmul.f32 0.6931472, %v1064_v21 }
 0x2dd   :  { %v307_v33 = vadd.f32 %v306_v31, %v304_v24  ;;  %v857_v63 = vadd.f32 %v856_v58, %v855_v39 }
 0x2de   :  { %v835_v2 = vpop.permute.xlu1 %834  ;;  %v198_v24 = vadd.f32 %v197_v27, %v1178_v25 }
 0x2df   :  { %309 = vrot.lane.b32.xlu0 %v307_v33, %s1116_s0  ;;  %v837_v17 = vmul.f32 %v835_v2, %v618_v41  ;;  %v841_v20 = vpop.permute.xlu0 %840 }
 0x2e1   :  { %v838_v52 = vadd.f32 %v837_v17, %v831_v28 }
 0x2e3   :  { %v581_v36 = vpop.permute.xlu1 %580  ;;  %v843_v43 = vadd.f32 %v841_v20, %v838_v52 }
 0x2e4   :  { %v846_v57 = vpop.permute.xlu0 %845  ;;  %v583_v13 = vadd.f32 %v581_v36, %v578_v6 }
 0x2e6   :  { %v865_v60 = vsub.f32 %v583_v13, %v843_v43  ;;  %v871_v8 = vadd.f32 %v843_v43, %v583_v13 }
 0x2e8   :  { %v609_v40 = vpop.permute.xlu1 %608  ;;  %v866_v23 = vand.u32 2147483647, %v865_v60 }
 0x2e9   :  { %v611_v53 = vmul.f32 %v609_v40, %v43_v48  ;;  %v884_v3 = vpop.permute.xlu0 %883 }
 0x2eb   :  { %v848_v61 = vadd.f32 %v846_v57, %v611_v53 }
 0x2ed   :  { %v586_v50 = vpop.permute.xlu1 %585 }
 0x2ee   :  { %v588_v11 = vadd.f32 %v586_v50, %v366_v55 }
 0x2f0   :  { %v863_v62 = vsub.f32 %v588_v11, %v848_v61 }
 0x2f2   :  { %v595_v59 = vpop.permute.xlu1 %594  ;;  %v864_v44 = vand.u32 2147483647, %v863_v62 }
 0x2f3   :  { %v597_v1 = vadd.f32 %v595_v59, %v592_v10 }
 0x2f4   :  { %v867_v9 = vadd.f32 %v866_v23, %v864_v44 }
 0x2f7   :  { %v860_v56 = vpop.permute.xlu1 %859 }
 0x2f8   :  { %v862_v38 = vadd.f32 %v860_v56, %v857_v63 }
 0x2fa   :  { %v868_v5 = vsub.f32 %v597_v1, %v862_v38  ;;  %v881_v7 = vadd.f32 %v862_v38, %v597_v1 }
 0x2fc   :  { %v869_v12 = vand.u32 2147483647, %v868_v5  ;;  %v876_v37 = vpop.permute.xlu1 %875  ;;  %v886_v14 = vsub.f32 %v881_v7, %v884_v3 }
 0x2fd   :  { %v878_v15 = vsub.f32 %v871_v8, %v876_v37 }
 0x2fe   :  { %v870_v16 = vadd.f32 %v869_v12, %v867_v9  ;;  %v887_v18 = vand.u32 2147483647, %v886_v14 }
 0x2ff   :  { %v879_v6 = vand.u32 2147483647, %v878_v15 }
 0x300   :  { %v168_v4 = vpop.permute.xlu1 %167 }
 0x301   :  { %v880_v19 = vadd.f32 %v879_v6, %v864_v44  ;;  %v170_v54 = vsel %vm67_vm7, %v168_v4, 0.0 }
 0x302   :  { %171 = vadd.xlane.f32.xlu1 %v170_v54 }
 0x303   :  { %v888_v10 = vadd.f32 %v887_v18, %v880_v19 }
 0x305   :  { %v889_v22 = vmin.f32 %v870_v16, %v888_v10 }
 0x307   :  { %v890_v45 = vand.u32 2147483647, %v889_v22 }
 0x308   :  { %s1403_s1 = spop %968 }
 0x309   :  { %s145_s18 = smul.f32 0.125, %s1403_s1  ;;  %v891_v26 = vmin.f32 %v890_v45, 1.0 }
 0x30b   :  { %921 = sst [smem:[#allocation2 + $0x2]] %s145_s18  ;;  %v893_v30 = vmul.f32 0.5, %v891_v26  ;;  %v892_v2 = vsub.f32 %v890_v45, %v891_v26 }
 0x30c   :  { %s907_s21 = sadd.f32 %s145_s18, %s78_s10 }
 0x30d   :  { %v894_v31 = vmul.f32 %v893_v30, %v891_v26 }
 0x30f   :  { %v895_v35 = vadd.f32 %v894_v31, %v892_v2 }
 0x311   :  { %v896_v49 = vsel %vm192_vm6, %v895_v35, 0.0 }
 0x332   :  { %v210_v0 = vpop.xlane.xlu1 %209 }
 0x333   :  { %v211_v33 = vsub.f32 %v198_v24, %v210_v0 }
 0x335   :  { %v212_v34 = vsel %vm67_vm7, %v211_v33, 0.0 }
 0x336   :  { %213 = vadd.xlane.f32.xlu0 %v212_v34 }
 0x33a   :  { %897 = vadd.xlane.f32.xlu0 %v896_v49 }
 0x351   :  { %v310_v36 = vpop.permute.xlu0 %309 }
 0x352   :  { %v312_v32 = vsel %vm67_vm7, %v310_v36, 0.0 }
 0x353   :  { %313 = vadd.xlane.f32.xlu1 %v312_v32 }
 0x38b   :  { %v172_v51 = vpop.xlane.xlu1 %171 }
 0x38c   :  { %v173_v29 = vrot.slane %v172_v51, 4 }
 0x38e   :  { %v174_v46 = vadd.f32 %v173_v29, %v172_v51 }
 0x390   :  { %v175_v41 = vrot.slane %v174_v46, 2 }
 0x392   :  { %v176_v25 = vadd.f32 %v175_v41, %v174_v46 }
 0x394   :  { %v177_v40 = vrot.slane %v176_v25, 1 }
 0x396   :  { %v178_v42 = vadd.f32 %v177_v40, %v176_v25 }
 0x398   :  { %970 = vpush %v178_v42 }
 0x3bf   :  { %v214_v47 = vpop.xlane.xlu0 %213 }
 0x3c0   :  { %v215_v17 = vrot.slane %v214_v47, 4 }
 0x3c2   :  { %v216_v48 = vadd.f32 %v215_v17, %v214_v47 }
 0x3c3   :  { %v898_v53 = vpop.xlane.xlu0 %897 }
 0x3c4   :  { %v217_v20 = vrot.slane %v216_v48, 2  ;;  %v899_v55 = vrot.slane %v898_v53, 4 }
 0x3c6   :  { %v218_v28 = vadd.f32 %v217_v20, %v216_v48  ;;  %v900_v57 = vadd.f32 %v899_v55, %v898_v53 }
 0x3c8   :  { %v219_v50 = vrot.slane %v218_v28, 1  ;;  %v901_v11 = vrot.slane %v900_v57, 2 }
 0x3c9   :  { %s971_s19 = spop %970 }
 0x3ca   :  { %s180_s2 = smul.f32 0.125, %s971_s19  ;;  %v220_v52 = vadd.f32 %v219_v50, %v218_v28  ;;  %v902_v13 = vadd.f32 %v901_v11, %v900_v57 }
 0x3cc   :  { %923 = sst [smem:[#allocation2 + $0x3]] %s180_s2  ;;  %972 = vpush %v220_v52  ;;  %v903_v62 = vrot.slane %v902_v13, 1  ;;  %s909_s23 = smul.f32 20.0, %s180_s2 }
 0x3ce   :  { %v904_v56 = vadd.f32 %v903_v62, %v902_v13 }
 0x3dc   :  { %v314_v58 = vpop.xlane.xlu1 %313 }
 0x3dd   :  { %v315_v39 = vrot.slane %v314_v58, 4 }
 0x3df   :  { %v316_v43 = vadd.f32 %v315_v39, %v314_v58 }
 0x3e1   :  { %v317_v61 = vrot.slane %v316_v43, 2 }
 0x3e3   :  { %v318_v59 = vadd.f32 %v317_v61, %v316_v43 }
 0x3e5   :  { %v319_v60 = vrot.slane %v318_v59, 1 }
 0x3e7   :  { %v320_v63 = vadd.f32 %v319_v60, %v318_v59 }
 0x3e9   :  { %974 = vpush %v320_v63 }
 0x3ea   :  { %984 = vpush %v904_v56 }
 0x3fd   :  { %s973_s20 = spop %972 }
 0x3fe   :  { %s222_s22 = smul.f32 0.125, %s973_s20 }
 0x400   :  { %s908_s24 = sadd.f32 %s907_s21, %s222_s22 }
 0x401   :  { %925 = sst [smem:[#allocation2 + $0x4]] %s222_s22 }
 0x402   :  { %s910_s25 = sadd.f32 %s909_s23, %s908_s24 }
 0x41a   :  { %s975_s26 = spop %974 }
 0x41b   :  { %s322_s27 = smul.f32 0.125, %s975_s26  ;;  %s985_s28 = spop %984 }
 0x41c   :  { %s906_s29 = smul.f32 0.015625, %s985_s28 }
 0x41d   :  { %s911_s30 = smul.f32 20.0, %s322_s27  ;;  %927 = sst [smem:[#allocation2 + $0x5]] %s322_s27 }
 0x41e   :  { %929 = sst [smem:[#allocation2 + $0x6]] %s906_s29  ;;  %s914_s6 = smul.f32 10.0, %s906_s29 }
 0x41f   :  { %s912_s4 = sadd.f32 %s911_s30, %s910_s25 }
 0x421   :  { %s913_s5 = sadd.f32 %s912_s4, %s103_s12 }
 0x423   :  { %s915_s7 = sadd.f32 %s914_s6, %s913_s5 }
 0x425   :  { %931 = sst [smem:[#allocation2 + $0x7]] %s915_s7 }
 0x426   :  { %939 = dma.smem_to_hbm %s1117_s8, 16, %s1425_s3, [#allocation3]  }
 0x427   :  { %1074 = dma.done.wait [#allocation3], 16  }
 0x428   :  { %1075 = vsyncadd [#allocation3], 4294967280 }
 0x429   :  { %943 = sfence }
 0x42a   :  { %944 = vsyncpa [#allocation3], 1 }

</bundles_post_ra>
